<compile_context>
chip_gen: v5e
topology: v5e:2x2
jax: 0.10.0
libtpu: 0.0.40
codegen_flags: <defaults>
</compile_context>

<pallas_src>
import functools

import jax
import jax.numpy as jnp
from jax.experimental import pallas as pl
from jax.experimental.pallas import tpu as pltpu

_LANE = 128
_BN_EPS = 1e-5


def _round_up(x, m):
    return (x + m - 1) // m * m


# ---------------------------------------------------------------------------
# Pallas kernels
# ---------------------------------------------------------------------------
def _conv_bias_stats_kernel(x_ref, w_ref, b_ref, y_ref, stats_ref, *, W):
    """Fused 3x3 conv (implicit GEMM) + bias + BN-statistics accumulation.

    x_ref:     (1, (TH+2)*W, 3*Cin_p)  bf16  width-pre-shifted activation chunk
    w_ref:     (3, 3*Cin_p, Cout_p)    bf16  weights (resident across the grid)
    b_ref:     (1, Cout_p)             f32   bias (resident)
    y_ref:     (1, TH*W, Cout_p)       f32   conv output tile (lane-dense channels)
    stats_ref: (2, Cout_p)             f32   [sum, sum_of_squares] accumulator
    """
    t = pl.program_id(0)

    @pl.when(t == 0)
    def _init():
        stats_ref[...] = jnp.zeros_like(stats_ref)

    tm = y_ref.shape[1]
    cout = y_ref.shape[2]
    acc = jnp.zeros((tm, cout), jnp.float32)
    # Static height shifts: 3 big MXU dots with K = 3*Cin_p, f32 accumulation.
    for dy in range(3):
        patch = x_ref[0, dy * W:dy * W + tm, :]
        acc += jnp.dot(patch, w_ref[dy], preferred_element_type=jnp.float32)
    acc += b_ref[...]

    y_ref[0] = acc
    # Per-channel partial sums for BatchNorm, accumulated into the resident output.
    stats_ref[...] += jnp.concatenate(
        [jnp.sum(acc, axis=0, keepdims=True),
         jnp.sum(acc * acc, axis=0, keepdims=True)], axis=0)


def _bn_apply_relu_kernel(y_ref, scale_ref, shift_ref, o_ref):
    """Elementwise (x * scale + shift) -> ReLU on lane-dense channel tiles."""
    o_ref[0] = jnp.maximum(y_ref[0] * scale_ref[...] + shift_ref[...], 0.0)


# ---------------------------------------------------------------------------
# Pallas wrappers
# ---------------------------------------------------------------------------
def _pick_row_tile(H, W, target_rows=256):
    """Largest divisor TH of H with TH*W <= target_rows (>= 1)."""
    th = 1
    for cand in range(1, H + 1):
        if H % cand == 0 and cand * W <= target_rows:
            th = cand
    return th


def _conv_prep(x, th):
    """(N, H, W, Cp) -> bf16 row chunks (N*nT, (TH+2)*W, 3*Cp).

    Zero-pads spatially and materializes only the 3 width-shifted copies
    (channel order (dx, c)); the 3 height shifts stay implicit and are taken as
    static slices inside the conv kernel.  The BN-apply of the previous layer
    (if any) fuses into this elementwise/layout pass under XLA.
    """
    N, H, W, Cp = x.shape
    xp = jnp.pad(x, ((0, 0), (1, 1), (1, 1), (0, 0)))
    xs = jnp.concatenate([xp[:, :, dx:dx + W, :] for dx in range(3)], axis=-1)
    nT = H // th
    rows = jnp.arange(nT)[:, None] * th + jnp.arange(th + 2)[None, :]
    chunks = xs[:, rows]                                   # (N, nT, TH+2, W, 3Cp)
    return chunks.reshape(N * nT, (th + 2) * W, 3 * Cp).astype(jnp.bfloat16)


def conv3x3_bias_stats(chunks, w, b, *, W, tm):
    """chunks: (T, (TH+2)*W, 3*Cin_p) bf16; w: (3, 3*Cin_p, Cout_p) bf16;
    b: (1, Cout_p) f32  ->  y: (T, TH*W, Cout_p) f32, stats: (2, Cout_p) f32."""
    T, chunk_rows, kc = chunks.shape
    cout_p = w.shape[2]
    kernel = functools.partial(_conv_bias_stats_kernel, W=W)
    return pl.pallas_call(
        kernel,
        out_shape=(jax.ShapeDtypeStruct((T, tm, cout_p), jnp.float32),
                   jax.ShapeDtypeStruct((2, cout_p), jnp.float32)),
        grid=(T,),
        in_specs=[
            pl.BlockSpec((1, chunk_rows, kc), lambda t: (t, 0, 0)),
            pl.BlockSpec((3, kc, cout_p), lambda t: (0, 0, 0)),    # resident weights
            pl.BlockSpec((1, cout_p), lambda t: (0, 0)),           # resident bias
        ],
        out_specs=(
            pl.BlockSpec((1, tm, cout_p), lambda t: (t, 0, 0)),
            pl.BlockSpec((2, cout_p), lambda t: (0, 0)),           # stats accumulator
        ),
        compiler_params=pltpu.CompilerParams(
            # The (2, Cout_p) stats output is revisited on every step, so the grid
            # axis is a serial reduction axis.  Tiles are sized well below the
            # per-generation VMEM budgets (v7x 64 MiB physical).
            dimension_semantics=("arbitrary",),
            vmem_limit_bytes=32 * 1024 * 1024,
        ),
    )(chunks, w, b)


def bn_apply_relu(y, scale, shift):
    """y: (T, TM, Cp) f32; scale/shift: (Cp,) f32 -> (T, TM, Cp) f32."""
    T, tm, cp = y.shape
    return pl.pallas_call(
        _bn_apply_relu_kernel,
        out_shape=jax.ShapeDtypeStruct((T, tm, cp), jnp.float32),
        grid=(T,),
        in_specs=[
            pl.BlockSpec((1, tm, cp), lambda t: (t, 0, 0)),
            pl.BlockSpec((1, cp), lambda t: (0, 0)),
            pl.BlockSpec((1, cp), lambda t: (0, 0)),
        ],
        out_specs=pl.BlockSpec((1, tm, cp), lambda t: (t, 0, 0)),
        compiler_params=pltpu.CompilerParams(dimension_semantics=("parallel",)),
    )(y, scale.reshape(1, cp), shift.reshape(1, cp))


def _bn_affine(stats, gamma_p, beta_p, count):
    """Turn [sum, sumsq] into the per-channel affine (scale, shift) of train-mode BN."""
    mean = stats[0] / count
    var = jnp.maximum(stats[1] / count - mean * mean, 0.0)   # biased variance, f32
    inv = jax.lax.rsqrt(var + _BN_EPS)
    scale = gamma_p * inv
    shift = beta_p - mean * scale
    return scale, shift


# ---------------------------------------------------------------------------
# Parameter / layout prep
# ---------------------------------------------------------------------------
def _prep_conv_weight(w_oihw, cin_p, cout_p):
    """torch (Cout, Cin, 3, 3) -> (3, 3*Cin_p, Cout_p) bf16 with K order (dx, cin)."""
    cout, cin, kh, kw = w_oihw.shape
    w = jnp.transpose(w_oihw, (2, 3, 1, 0))                  # (dy, dx, cin, cout)
    w = jnp.pad(w, ((0, 0), (0, 0), (0, cin_p - cin), (0, cout_p - cout)))
    return w.reshape(kh, kw * cin_p, cout_p).astype(jnp.bfloat16)


def _pad_vec(v, cp):
    return jnp.pad(v, (0, cp - v.shape[0]))


def _interp_matrix(out_size, in_size):
    if in_size == 1:
        return jnp.ones((out_size, 1), jnp.float32)
    i = jnp.arange(out_size, dtype=jnp.float32)
    s = i * (in_size - 1) / (out_size - 1)                   # align_corners=True
    i0 = jnp.clip(jnp.floor(s).astype(jnp.int32), 0, in_size - 2)
    w1 = s - i0.astype(jnp.float32)
    w0 = 1.0 - w1
    M = jnp.zeros((out_size, in_size), jnp.float32)
    M = M.at[jnp.arange(out_size), i0].add(w0)
    M = M.at[jnp.arange(out_size), i0 + 1].add(w1)
    return M


# ---------------------------------------------------------------------------
# Up.forward
# ---------------------------------------------------------------------------
@jax.jit
def up_forward(x1, x2, params):
    # x1, x2 arrive NCHW (PyTorch convention); switch to NHWC once, up front.
    x1 = jnp.transpose(x1, (0, 2, 3, 1))
    x2 = jnp.transpose(x2, (0, 2, 3, 1))

    # Bilinear x2 upsample (align_corners=True) in NHWC.
    _, h, w, _ = x1.shape
    Mh = _interp_matrix(2 * h, h)
    Mw = _interp_matrix(2 * w, w)
    x1u = jnp.einsum("nhwc,ih,jw->nijc", x1, Mh, Mw)

    diffY = x2.shape[1] - x1u.shape[1]
    diffX = x2.shape[2] - x1u.shape[2]
    x1u = jnp.pad(x1u, ((0, 0),
                        (diffY // 2, diffY - diffY // 2),
                        (diffX // 2, diffX - diffX // 2),
                        (0, 0)))
    x = jnp.concatenate([x2, x1u], axis=-1)                  # (N, H, W, in_ch)

    N, H, W, in_ch = x.shape
    mid_ch = params["g1"].shape[0]
    out_ch = params["g2"].shape[0]
    cin_p = _round_up(in_ch, _LANE)
    cmid_p = _round_up(mid_ch, _LANE)
    cout_p = _round_up(out_ch, _LANE)

    th = _pick_row_tile(H, W)
    tm = th * W
    count = N * H * W

    # Lane-dense channel padding (padded channels stay exactly zero end-to-end).
    x = jnp.pad(x, ((0, 0), (0, 0), (0, 0), (0, cin_p - in_ch)))

    w1 = _prep_conv_weight(params["w1"], cin_p, cmid_p)
    b1 = _pad_vec(params["b1"], cmid_p).reshape(1, cmid_p)
    w2 = _prep_conv_weight(params["w2"], cmid_p, cout_p)
    b2 = _pad_vec(params["b2"], cout_p).reshape(1, cout_p)

    # --- conv1 + bias + BN1 statistics (Pallas) ---
    y1, stats1 = conv3x3_bias_stats(_conv_prep(x, th), w1, b1, W=W, tm=tm)
    scale1, shift1 = _bn_affine(stats1, _pad_vec(params["g1"], cmid_p),
                                _pad_vec(params["be1"], cmid_p), count)

    # BN1-apply + ReLU: left to XLA so it fuses with conv2's pad/width-shift/bf16
    # prep (avoids a standalone full-activation round trip).
    a1 = jnp.maximum(y1 * scale1 + shift1, 0.0).reshape(N, H, W, cmid_p)

    # --- conv2 + bias + BN2 statistics (Pallas) ---
    y2, stats2 = conv3x3_bias_stats(_conv_prep(a1, th), w2, b2, W=W, tm=tm)
    scale2, shift2 = _bn_affine(stats2, _pad_vec(params["g2"], cout_p),
                                _pad_vec(params["be2"], cout_p), count)

    # --- BN2-apply + ReLU (Pallas, tiled, lane-dense) ---
    out = bn_apply_relu(y2, scale2, shift2)
    out = out.reshape(N, H, W, cout_p)[..., :out_ch]
    return jnp.transpose(out, (0, 3, 1, 2))                  # NHWC -> NCHW boundary


# ---------------------------------------------------------------------------
# Params + pure-JAX reference (f32) for a sanity check
# ---------------------------------------------------------------------------
def make_params(key, in_ch, mid_ch, out_ch):
    k1, k2, k3, k4 = jax.random.split(key, 4)
    return {
        "w1": jax.random.normal(k1, (mid_ch, in_ch, 3, 3), jnp.float32) * 0.1,
        "b1": jax.random.normal(k2, (mid_ch,), jnp.float32) * 0.1,
        "g1": jnp.ones((mid_ch,), jnp.float32),
        "be1": jnp.zeros((mid_ch,), jnp.float32),
        "w2": jax.random.normal(k3, (out_ch, mid_ch, 3, 3), jnp.float32) * 0.1,
        "b2": jax.random.normal(k4, (out_ch,), jnp.float32) * 0.1,
        "g2": jnp.ones((out_ch,), jnp.float32),
        "be2": jnp.zeros((out_ch,), jnp.float32),
    }


@jax.jit
def _reference(x1, x2, params):
    x1 = jnp.transpose(x1, (0, 2, 3, 1))
    x2 = jnp.transpose(x2, (0, 2, 3, 1))
    _, h, w, _ = x1.shape
    x1u = jnp.einsum("nhwc,ih,jw->nijc", x1, _interp_matrix(2 * h, h),
                     _interp_matrix(2 * w, w))
    dY = x2.shape[1] - x1u.shape[1]
    dX = x2.shape[2] - x1u.shape[2]
    x1u = jnp.pad(x1u, ((0, 0), (dY // 2, dY - dY // 2),
                        (dX // 2, dX - dX // 2), (0, 0)))
    x = jnp.concatenate([x2, x1u], axis=-1)

    def conv_bn_relu(x, w_oihw, b, g, be):
        wk = jnp.transpose(w_oihw, (2, 3, 1, 0))             # HWIO
        y = jax.lax.conv_general_dilated(
            x, wk, (1, 1), "SAME",
            dimension_numbers=("NHWC", "HWIO", "NHWC")) + b
        mean = jnp.mean(y, axis=(0, 1, 2))
        var = jnp.mean(jnp.square(y - mean), axis=(0, 1, 2))
        return jnp.maximum((y - mean) * jax.lax.rsqrt(var + _BN_EPS) * g + be, 0.0)

    y = conv_bn_relu(x, params["w1"], params["b1"], params["g1"], params["be1"])
    y = conv_bn_relu(y, params["w2"], params["b2"], params["g2"], params["be2"])
    return jnp.transpose(y, (0, 3, 1, 2))


if __name__ == "__main__":
    key = jax.random.PRNGKey(0)
    kx1, kx2, kp = jax.random.split(key, 3)

    # Up(in_ch=8, out_ch=4): x1 is the low-res feature map, x2 the skip (NCHW).
    x1 = jax.random.normal(kx1, (2, 4, 8, 8), jnp.float32)
    x2 = jax.random.normal(kx2, (2, 4, 16, 16), jnp.float32)
    in_ch = x1.shape[1] + x2.shape[1]                        # 8 after concat
    out_ch = 4

    params = make_params(kp, in_ch, in_ch, out_ch)

    out = jax.block_until_ready(up_forward(x1, x2, params))

    assert out.shape == (2, out_ch, 16, 16), out.shape
    assert bool(jnp.isfinite(out).all())

    # Loose tolerance: kernel path uses bf16 MXU operands with f32 accumulation.
    ref = jax.block_until_ready(_reference(x1, x2, params))
    err = float(jnp.max(jnp.abs(out - ref)))
    assert err < 2e-1, err

    print("KERNEL_OK")
</pallas_src>

<mosaic_0001>
module attributes {stable_mosaic.version = 11 : i64} {
  func.func @_conv_bias_stats_kernel(%arg0: i32, %arg1: memref<1x288x384xbf16, #tpu.memory_space<vmem>>, %arg2: memref<3x384x128xbf16, #tpu.memory_space<vmem>>, %arg3: memref<1x128xf32, #tpu.memory_space<vmem>>, %arg4: memref<1x256x128xf32, #tpu.memory_space<vmem>>, %arg5: memref<2x128xf32, #tpu.memory_space<vmem>>) attributes {dimension_semantics = [#tpu.dimension_semantics<arbitrary>], iteration_bounds = array<i64: 2>, scalar_prefetch = 0 : i64, scratch_operands = 0 : i64, tpu.core_type = #tpu.core_type<tc>, window_params = [{transform_indices = @transform_0, window_bounds = array<i64: 1, 288, 384>}, {pipeline_mode = #tpu.pipeline_mode<synchronous>, transform_indices = @transform_1, window_bounds = array<i64: 3, 384, 128>}, {pipeline_mode = #tpu.pipeline_mode<synchronous>, transform_indices = @transform_2, window_bounds = array<i64: 1, 128>}, {transform_indices = @transform_3, window_bounds = array<i64: 1, 256, 128>}, {pipeline_mode = #tpu.pipeline_mode<synchronous>, transform_indices = @transform_4, window_bounds = array<i64: 2, 128>}]} {
    %c0_i32 = arith.constant 0 : i32
    %0 = arith.cmpi eq, %arg0, %c0_i32 : i32
    %1 = arith.extui %0 : i1 to i32
    %c0_i32_0 = arith.constant 0 : i32
    %2 = arith.cmpi ne, %1, %c0_i32_0 : i32
    scf.if %2 {
      %cst_28 = arith.constant 0.000000e+00 : f32
      %37 = vector.broadcast %cst_28 : f32 to vector<2x128xf32>
      %c0_29 = arith.constant 0 : index
      %c0_30 = arith.constant 0 : index
      %38 = vector.load %arg5[%c0_29, %c0_30] : memref<2x128xf32, #tpu.memory_space<vmem>>, vector<2x128xf32>
      tpu.vector_store %arg5[%c0_29, %c0_30], %37 {strides = array<i32>} : memref<2x128xf32, #tpu.memory_space<vmem>>, vector<2x128xf32>,
    } else {
    }
    %cst = arith.constant 0.000000e+00 : f32
    %3 = vector.broadcast %cst : f32 to vector<256x128xf32>
    %c0 = arith.constant 0 : index
    %c0_1 = arith.constant 0 : index
    %c0_2 = arith.constant 0 : index
    %4 = vector.load %arg1[%c0, %c0_1, %c0_2] : memref<1x288x384xbf16, #tpu.memory_space<vmem>>, vector<1x256x384xbf16>
    %5 = vector.shape_cast %4 : vector<1x256x384xbf16> to vector<256x384xbf16>
    %c0_3 = arith.constant 0 : index
    %c0_4 = arith.constant 0 : index
    %c0_5 = arith.constant 0 : index
    %6 = vector.load %arg2[%c0_3, %c0_4, %c0_5] : memref<3x384x128xbf16, #tpu.memory_space<vmem>>, vector<1x384x128xbf16>
    %7 = vector.shape_cast %6 : vector<1x384x128xbf16> to vector<384x128xbf16>
    %cst_6 = arith.constant dense<0.000000e+00> : vector<256x128xf32>
    %8 = tpu.matmul %5, %7, %cst_6 {dimension_numbers = #tpu.dot_dimension_numbers<[1], [0], [0], [1], [0, 0, 1, 1], [], []>} : vector<256x384xbf16>, vector<384x128xbf16>, vector<256x128xf32> -> vector<256x128xf32>
    %9 = arith.addf %3, %8 : vector<256x128xf32>
    %c0_7 = arith.constant 0 : index
    %c16 = arith.constant 16 : index
    %c0_8 = arith.constant 0 : index
    %10 = vector.load %arg1[%c0_7, %c16, %c0_8] : memref<1x288x384xbf16, #tpu.memory_space<vmem>>, vector<1x256x384xbf16>
    %11 = vector.shape_cast %10 : vector<1x256x384xbf16> to vector<256x384xbf16>
    %c1 = arith.constant 1 : index
    %c0_9 = arith.constant 0 : index
    %c0_10 = arith.constant 0 : index
    %12 = vector.load %arg2[%c1, %c0_9, %c0_10] : memref<3x384x128xbf16, #tpu.memory_space<vmem>>, vector<1x384x128xbf16>
    %13 = vector.shape_cast %12 : vector<1x384x128xbf16> to vector<384x128xbf16>
    %cst_11 = arith.constant dense<0.000000e+00> : vector<256x128xf32>
    %14 = tpu.matmul %11, %13, %cst_11 {dimension_numbers = #tpu.dot_dimension_numbers<[1], [0], [0], [1], [0, 0, 1, 1], [], []>} : vector<256x384xbf16>, vector<384x128xbf16>, vector<256x128xf32> -> vector<256x128xf32>
    %15 = arith.addf %9, %14 : vector<256x128xf32>
    %c0_12 = arith.constant 0 : index
    %c32 = arith.constant 32 : index
    %c0_13 = arith.constant 0 : index
    %16 = vector.load %arg1[%c0_12, %c32, %c0_13] : memref<1x288x384xbf16, #tpu.memory_space<vmem>>, vector<1x256x384xbf16>
    %17 = vector.shape_cast %16 : vector<1x256x384xbf16> to vector<256x384xbf16>
    %c2 = arith.constant 2 : index
    %c0_14 = arith.constant 0 : index
    %c0_15 = arith.constant 0 : index
    %18 = vector.load %arg2[%c2, %c0_14, %c0_15] : memref<3x384x128xbf16, #tpu.memory_space<vmem>>, vector<1x384x128xbf16>
    %19 = vector.shape_cast %18 : vector<1x384x128xbf16> to vector<384x128xbf16>
    %cst_16 = arith.constant dense<0.000000e+00> : vector<256x128xf32>
    %20 = tpu.matmul %17, %19, %cst_16 {dimension_numbers = #tpu.dot_dimension_numbers<[1], [0], [0], [1], [0, 0, 1, 1], [], []>} : vector<256x384xbf16>, vector<384x128xbf16>, vector<256x128xf32> -> vector<256x128xf32>
    %21 = arith.addf %15, %20 : vector<256x128xf32>
    %c0_17 = arith.constant 0 : index
    %c0_18 = arith.constant 0 : index
    %22 = vector.load %arg3[%c0_17, %c0_18] : memref<1x128xf32, #tpu.memory_space<vmem>>, vector<1x128xf32>
    %23 = vector.broadcast %22 : vector<1x128xf32> to vector<256x128xf32>
    %24 = arith.addf %21, %23 : vector<256x128xf32>
    %c0_19 = arith.constant 0 : index
    %c0_20 = arith.constant 0 : index
    %c0_21 = arith.constant 0 : index
    %25 = vector.load %arg4[%c0_19, %c0_20, %c0_21] : memref<1x256x128xf32, #tpu.memory_space<vmem>>, vector<1x256x128xf32>
    %26 = vector.shape_cast %25 : vector<1x256x128xf32> to vector<256x128xf32>
    %27 = vector.shape_cast %24 : vector<256x128xf32> to vector<1x256x128xf32>
    tpu.vector_store %arg4[%c0_19, %c0_20, %c0_21], %27 {strides = array<i32>} : memref<1x256x128xf32, #tpu.memory_space<vmem>>, vector<1x256x128xf32>,
    %c0_22 = arith.constant 0 : index
    %c0_23 = arith.constant 0 : index
    %28 = vector.load %arg5[%c0_22, %c0_23] : memref<2x128xf32, #tpu.memory_space<vmem>>, vector<2x128xf32>
    %cst_24 = arith.constant dense<0.000000e+00> : vector<128xf32>
    %29 = vector.multi_reduction <add>, %24, %cst_24 [0] : vector<256x128xf32> to vector<128xf32>
    %30 = vector.shape_cast %29 : vector<128xf32> to vector<1x128xf32>
    %31 = arith.mulf %24, %24 : vector<256x128xf32>
    %cst_25 = arith.constant dense<0.000000e+00> : vector<128xf32>
    %32 = vector.multi_reduction <add>, %31, %cst_25 [0] : vector<256x128xf32> to vector<128xf32>
    %33 = vector.shape_cast %32 : vector<128xf32> to vector<1x128xf32>
    %34 = tpu.concatenate %30, %33 in 0 : vector<1x128xf32>, vector<1x128xf32> -> vector<2x128xf32>
    %35 = arith.addf %28, %34 : vector<2x128xf32>
    %c0_26 = arith.constant 0 : index
    %c0_27 = arith.constant 0 : index
    %36 = vector.load %arg5[%c0_26, %c0_27] : memref<2x128xf32, #tpu.memory_space<vmem>>, vector<2x128xf32>
    tpu.vector_store %arg5[%c0_26, %c0_27], %35 {strides = array<i32>} : memref<2x128xf32, #tpu.memory_space<vmem>>, vector<2x128xf32>,
    return
  }
  func.func @transform_0(%arg0: i32) -> (i32, i32, i32) {
    %c0_i32 = arith.constant 0 : i32
    %c0_i32_0 = arith.constant 0 : i32
    %c0_i32_1 = arith.constant 0 : i32
    return %arg0, %c0_i32, %c0_i32_0 : i32, i32, i32
  }
  func.func @transform_1(%arg0: i32) -> (i32, i32, i32) {
    %c0_i32 = arith.constant 0 : i32
    %c0_i32_0 = arith.constant 0 : i32
    %c0_i32_1 = arith.constant 0 : i32
    %c0_i32_2 = arith.constant 0 : i32
    return %c0_i32, %c0_i32_0, %c0_i32_1 : i32, i32, i32
  }
  func.func @transform_2(%arg0: i32) -> (i32, i32) {
    %c0_i32 = arith.constant 0 : i32
    %c0_i32_0 = arith.constant 0 : i32
    %c0_i32_1 = arith.constant 0 : i32
    return %c0_i32, %c0_i32_0 : i32, i32
  }
  func.func @transform_3(%arg0: i32) -> (i32, i32, i32) {
    %c0_i32 = arith.constant 0 : i32
    %c0_i32_0 = arith.constant 0 : i32
    %c0_i32_1 = arith.constant 0 : i32
    return %arg0, %c0_i32, %c0_i32_0 : i32, i32, i32
  }
  func.func @transform_4(%arg0: i32) -> (i32, i32) {
    %c0_i32 = arith.constant 0 : i32
    %c0_i32_0 = arith.constant 0 : i32
    %c0_i32_1 = arith.constant 0 : i32
    return %c0_i32, %c0_i32_0 : i32, i32
  }
}

module attributes {stable_mosaic.version = 11 : i64} {
  func.func @_bn_apply_relu_kernel(%arg0: i32, %arg1: memref<1x256x128xf32, #tpu.memory_space<vmem>>, %arg2: memref<1x128xf32, #tpu.memory_space<vmem>>, %arg3: memref<1x128xf32, #tpu.memory_space<vmem>>, %arg4: memref<1x256x128xf32, #tpu.memory_space<vmem>>) attributes {dimension_semantics = [#tpu.dimension_semantics<parallel>], iteration_bounds = array<i64: 2>, scalar_prefetch = 0 : i64, scratch_operands = 0 : i64, tpu.core_type = #tpu.core_type<tc>, window_params = [{transform_indices = @transform_0, window_bounds = array<i64: 1, 256, 128>}, {pipeline_mode = #tpu.pipeline_mode<synchronous>, transform_indices = @transform_1, window_bounds = array<i64: 1, 128>}, {pipeline_mode = #tpu.pipeline_mode<synchronous>, transform_indices = @transform_2, window_bounds = array<i64: 1, 128>}, {transform_indices = @transform_3, window_bounds = array<i64: 1, 256, 128>}]} {
    %c0 = arith.constant 0 : index
    %c0_0 = arith.constant 0 : index
    %c0_1 = arith.constant 0 : index
    %0 = vector.load %arg1[%c0, %c0_0, %c0_1] : memref<1x256x128xf32, #tpu.memory_space<vmem>>, vector<1x256x128xf32>
    %1 = vector.shape_cast %0 : vector<1x256x128xf32> to vector<256x128xf32>
    %c0_2 = arith.constant 0 : index
    %c0_3 = arith.constant 0 : index
    %2 = vector.load %arg2[%c0_2, %c0_3] : memref<1x128xf32, #tpu.memory_space<vmem>>, vector<1x128xf32>
    %3 = vector.broadcast %2 : vector<1x128xf32> to vector<256x128xf32>
    %4 = arith.mulf %1, %3 : vector<256x128xf32>
    %c0_4 = arith.constant 0 : index
    %c0_5 = arith.constant 0 : index
    %5 = vector.load %arg3[%c0_4, %c0_5] : memref<1x128xf32, #tpu.memory_space<vmem>>, vector<1x128xf32>
    %6 = vector.broadcast %5 : vector<1x128xf32> to vector<256x128xf32>
    %7 = arith.addf %4, %6 : vector<256x128xf32>
    %cst = arith.constant 0.000000e+00 : f32
    %8 = vector.broadcast %cst : f32 to vector<256x128xf32>
    %9 = arith.maximumf %7, %8 : vector<256x128xf32>
    %c0_6 = arith.constant 0 : index
    %c0_7 = arith.constant 0 : index
    %c0_8 = arith.constant 0 : index
    %10 = vector.load %arg4[%c0_6, %c0_7, %c0_8] : memref<1x256x128xf32, #tpu.memory_space<vmem>>, vector<1x256x128xf32>
    %11 = vector.shape_cast %10 : vector<1x256x128xf32> to vector<256x128xf32>
    %12 = vector.shape_cast %9 : vector<256x128xf32> to vector<1x256x128xf32>
    tpu.vector_store %arg4[%c0_6, %c0_7, %c0_8], %12 {strides = array<i32>} : memref<1x256x128xf32, #tpu.memory_space<vmem>>, vector<1x256x128xf32>,
    return
  }
  func.func @transform_0(%arg0: i32) -> (i32, i32, i32) {
    %c0_i32 = arith.constant 0 : i32
    %c0_i32_0 = arith.constant 0 : i32
    %c0_i32_1 = arith.constant 0 : i32
    return %arg0, %c0_i32, %c0_i32_0 : i32, i32, i32
  }
  func.func @transform_1(%arg0: i32) -> (i32, i32) {
    %c0_i32 = arith.constant 0 : i32
    %c0_i32_0 = arith.constant 0 : i32
    %c0_i32_1 = arith.constant 0 : i32
    return %c0_i32, %c0_i32_0 : i32, i32
  }
  func.func @transform_2(%arg0: i32) -> (i32, i32) {
    %c0_i32 = arith.constant 0 : i32
    %c0_i32_0 = arith.constant 0 : i32
    %c0_i32_1 = arith.constant 0 : i32
    return %c0_i32, %c0_i32_0 : i32, i32
  }
  func.func @transform_3(%arg0: i32) -> (i32, i32, i32) {
    %c0_i32 = arith.constant 0 : i32
    %c0_i32_0 = arith.constant 0 : i32
    %c0_i32_1 = arith.constant 0 : i32
    return %arg0, %c0_i32, %c0_i32_0 : i32, i32, i32
  }
}

</mosaic_0001>

<bundles_post_ra>
// kernel: up_forward.3
= control target key start
LH: loop header
LB: loop body
LE: loop exit
PB: predicated region body
PF: predicated region fallthrough
CT: control target
= control target key end

     0   :  { %s3544_s15 = smov 0   ;;  %s4369_s0 = inlined_call_operand.vmem [shape: bf16[2,288,384], index: 0, kind: input, shape index: {}]   ;;  %s4370_s1 = inlined_call_operand.vmem [shape: bf16[3,384,128], index: 1, kind: input, shape index: {}]   ;;  %s4371_s2 = inlined_call_operand.vmem [shape: f32[1,128], index: 2, kind: input, shape index: {}]   ;;  %s4372_s3 = inlined_call_operand.vmem [shape: f32[2,256,128], index: 3, kind: output, shape index: {0}]   ;;  %s4373_s4 = inlined_call_operand.vmem [shape: f32[2,128], index: 4, kind: output, shape index: {1}]  }
   0x1 LB: > { %s2512_s16 = sadd.s32 4294967295, %s3516_s15   ;;  %p2516_p0 = scmp.ge.s32.totalorder %s3516_s15, 1  ;;  %s3516_s15 = sphi %s3544_s15, %s15_s15  }
   0x2   : > { %p160_p1 = scmp.lt.s32.totalorder %s3516_s15, 3 }
   0x4   : > { %p161_p2 = pnand %p2516_p0, %p160_p1 }
   0x6   : > { %164 = sbr.rel (%p161_p2) target bundleno = 782 (0x30e), region = 32 }
   0xb   : > { %p186_p3 = scmp.lt.s32.totalorder %s2512_s16, 1  ;;  %p2520_p4 = scmp.ne.s32.totalorder %s2512_s16, 0 }
   0xd   : > { %s187_s17 = scalar_select %p186_p3, %s2512_s16, 1 }
   0xe   : > { %199 = sbr.rel (%p2520_p4) target bundleno = 21 (0x15), region = 36 }
   0xf   : > { %s3499_s18 = smul.u32 432, %s187_s17  ;;  %s3303_s19 = sshll.u32 %s187_s17, 8 }
  0x10   : > { %s3555_s22 = scalar_lea.vmem %s4372_s3, %s3303_s19 }
  0x11   : > { %s3560_s25 = scalar_lea.vmem %s4369_s0, %s3499_s18 }
  0x13   : > { %v3518_v0 = vmov 0.0  }
  0x14   : > { %200 = vst [vmem:[%s4373_s4] sm:$0x3] %v3518_v0 }
  0x15 PF: > { %v3386_v1 = vld [vmem:[%s4370_s1 + $0xf8] sm:$0xff]  ;;  %v3385_v2 = vld [vmem:[%s4370_s1 + $0xf0] sm:$0xff]  ;;  %v3384_v3 = vld [vmem:[%s4370_s1 + $0xe8] sm:$0xff]  ;;  %vm2447_vm0 = vcmask 1040384  }
  0x16   : > { %766 = vmatpush.bf16.msra.mxu0 %v3386_v1  ;;  %3475 = vmatpush.bf16.msra.mxu1 %v3386_v1  ;;  %v3383_v4 = vld [vmem:[%s4370_s1 + $0xe0] sm:$0xff]  ;;  %v3382_v5 = vld [vmem:[%s4370_s1 + $0xd8] sm:$0xff]  ;;  %v3381_v6 = vld [vmem:[%s4370_s1 + $0xd0] sm:$0xff] }
  0x17   : > { %3476 = vmatpush.bf16.msra.mxu2 %v3386_v1  ;;  %3477 = vmatpush.bf16.msra.mxu3 %v3386_v1  ;;  %v3380_v7 = vld [vmem:[%s4370_s1 + $0xc8] sm:$0xff]  ;;  %v3379_v8 = vld [vmem:[%s4370_s1 + $0xc0] sm:$0xff]  ;;  %v2571_v9 = vld [vmem:[%s3560_s25 + $0x18] sm:$0xf] }
  0x18   : > { %v3308_v10 = vld [vmem:[%s3560_s25 + $0x20] sm:$0xf0]  ;;  %v2619_v11 = vld [vmem:[%s3560_s25 + $0x78] sm:$0xf]  ;;  %v3401_v25 = vld [vmem:[%s4370_s1 + $0x170] sm:$0xff] }
  0x19   : > { %v3320_v12 = vld [vmem:[%s3560_s25 + $0x80] sm:$0xf0]  ;;  %v2667_v13 = vld [vmem:[%s3560_s25 + $0xd8] sm:$0xf]  ;;  %v3603_v19 = vor.u32 %v3308_v10, %v2571_v9  ;;  %v3358_v26 = vld [vmem:[%s4370_s1 + $0x30] sm:$0xff] }
  0x1a   : > { %767 = vmatpush.bf16.msra.mxu0 %v3385_v2  ;;  %3478 = vmatpush.bf16.msra.mxu1 %v3385_v2  ;;  %v3332_v14 = vld [vmem:[%s3560_s25 + $0xe0] sm:$0xf0]  ;;  %v2715_v15 = vld [vmem:[%s3560_s25 + $0x138] sm:$0xf]  ;;  %v3605_v20 = vor.u32 %v3320_v12, %v2619_v11  ;;  %v3393_v27 = vld [vmem:[%s4370_s1 + $0x130] sm:$0xff] }
  0x1b   : > { %3479 = vmatpush.bf16.msra.mxu2 %v3385_v2  ;;  %3480 = vmatpush.bf16.msra.mxu3 %v3385_v2  ;;  %v3344_v16 = vld [vmem:[%s3560_s25 + $0x140] sm:$0xf0]  ;;  %v3402_v17 = vld [vmem:[%s4370_s1 + $0x178] sm:$0xff]  ;;  %v3607_v21 = vor.u32 %v3332_v14, %v2667_v13  ;;  %v3366_v28 = vld [vmem:[%s4370_s1 + $0x70] sm:$0xff] }
  0x1c   : > { %v3359_v18 = vld [vmem:[%s4370_s1 + $0x38] sm:$0xff]  ;;  %v3609_v22 = vor.u32 %v3344_v16, %v2715_v15  ;;  %v3400_v29 = vld [vmem:[%s4370_s1 + $0x168] sm:$0xff]  ;;  %v2583_v33 = vld [vmem:[%s3560_s25 + $0x30] sm:$0xf] }
  0x1d   : > { %v3394_v23 = vld [vmem:[%s4370_s1 + $0x138] sm:$0xff]  ;;  %v3357_v30 = vld [vmem:[%s4370_s1 + $0x28] sm:$0xff]  ;;  %v3399_v34 = vld [vmem:[%s4370_s1 + $0x160] sm:$0xff] }
  0x1e   : > { %768 = vmatpush.bf16.msra.mxu0 %v3384_v3  ;;  %3481 = vmatpush.bf16.msra.mxu1 %v3384_v3  ;;  %v3367_v24 = vld [vmem:[%s4370_s1 + $0x78] sm:$0xff]  ;;  %v3392_v31 = vld [vmem:[%s4370_s1 + $0x128] sm:$0xff]  ;;  %v3356_v35 = vld [vmem:[%s4370_s1 + $0x20] sm:$0xff] }
  0x1f   : > { %3482 = vmatpush.bf16.msra.mxu2 %v3384_v3  ;;  %3483 = vmatpush.bf16.msra.mxu3 %v3384_v3  ;;  %v3365_v32 = vld [vmem:[%s4370_s1 + $0x68] sm:$0xff]  ;;  %v3311_v36 = vld [vmem:[%s3560_s25 + $0x38] sm:$0xf0]  ;;  %v2631_v37 = vld [vmem:[%s3560_s25 + $0x90] sm:$0xf] }
  0x20   : > { %v3323_v38 = vld [vmem:[%s3560_s25 + $0x98] sm:$0xf0]  ;;  %v2679_v39 = vld [vmem:[%s3560_s25 + $0xf0] sm:$0xf]  ;;  %v3391_v43 = vld [vmem:[%s4370_s1 + $0x120] sm:$0xff]  ;;  %v3671_v47 = vor.u32 %v3311_v36, %v2583_v33 }
  0x21   : > { %v3335_v40 = vld [vmem:[%s3560_s25 + $0xf8] sm:$0xf0]  ;;  %v2727_v41 = vld [vmem:[%s3560_s25 + $0x150] sm:$0xf]  ;;  %v3364_v44 = vld [vmem:[%s4370_s1 + $0x60] sm:$0xff]  ;;  %v3673_v48 = vor.u32 %v3323_v38, %v2631_v37 }
  0x22   : > { %769 = vmatpush.bf16.msra.mxu0 %v3383_v4  ;;  %3484 = vmatpush.bf16.msra.mxu1 %v3383_v4  ;;  %v3347_v42 = vld [vmem:[%s3560_s25 + $0x158] sm:$0xf0]  ;;  %v3675_v49 = vor.u32 %v3335_v40, %v2679_v39  ;;  %v3397_v53 = vld [vmem:[%s4370_s1 + $0x150] sm:$0xff]  ;;  %v3396_v57 = vld [vmem:[%s4370_s1 + $0x148] sm:$0xff] }
  0x23   : > { %3485 = vmatpush.bf16.msra.mxu2 %v3383_v4  ;;  %3486 = vmatpush.bf16.msra.mxu3 %v3383_v4  ;;  %v3398_v45 = vld [vmem:[%s4370_s1 + $0x158] sm:$0xff]  ;;  %v3677_v50 = vor.u32 %v3347_v42, %v2727_v41  ;;  %v3354_v54 = vld [vmem:[%s4370_s1 + $0x10] sm:$0xff]  ;;  %v3353_v58 = vld [vmem:[%s4370_s1 + $0x8] sm:$0xff] }
  0x24   : > { %v3355_v46 = vld [vmem:[%s4370_s1 + $0x18] sm:$0xff]  ;;  %v3389_v55 = vld [vmem:[%s4370_s1 + $0x110] sm:$0xff]  ;;  %v3388_v59 = vld [vmem:[%s4370_s1 + $0x108] sm:$0xff] }
  0x25   : > { %v3390_v51 = vld [vmem:[%s4370_s1 + $0x118] sm:$0xff]  ;;  %v3362_v56 = vld [vmem:[%s4370_s1 + $0x50] sm:$0xff]  ;;  %v3361_v60 = vld [vmem:[%s4370_s1 + $0x48] sm:$0xff] }
  0x26   : > { %770 = vmatpush.bf16.msra.mxu0 %v3382_v5  ;;  %3487 = vmatpush.bf16.msra.mxu1 %v3382_v5  ;;  %v3363_v52 = vld [vmem:[%s4370_s1 + $0x58] sm:$0xff]  ;;  %v2595_v61 = vld [vmem:[%s3560_s25 + $0x48] sm:$0xf]  ;;  %v3395_v62 = vld [vmem:[%s4370_s1 + $0x140] sm:$0xff] }
  0x27   : > { %3488 = vmatpush.bf16.msra.mxu2 %v3382_v5  ;;  %3489 = vmatpush.bf16.msra.mxu3 %v3382_v5  ;;  %v3352_v63 = vld [vmem:[%s4370_s1] sm:$0xff]  ;;  %v3314_v0 = vld [vmem:[%s3560_s25 + $0x50] sm:$0xf0]  ;;  %v2643_v1 = vld [vmem:[%s3560_s25 + $0xa8] sm:$0xf] }
  0x28   : > { %v3326_v2 = vld [vmem:[%s3560_s25 + $0xb0] sm:$0xf0]  ;;  %v2691_v3 = vld [vmem:[%s3560_s25 + $0x108] sm:$0xf]  ;;  %v3733_v9 = vor.u32 %v3314_v0, %v2595_v61  ;;  %v3458_v13 = vld [vmem:[%s4370_s1 + $0x1b8] sm:$0xff] }
  0x29   : > { %v3338_v4 = vld [vmem:[%s3560_s25 + $0x110] sm:$0xf0]  ;;  %v2739_v5 = vld [vmem:[%s3560_s25 + $0x168] sm:$0xf]  ;;  %v3735_v10 = vor.u32 %v3326_v2, %v2643_v1  ;;  %v3466_v14 = vld [vmem:[%s4370_s1 + $0x1f8] sm:$0xff] }
  0x2a   : > { %771 = vmatpush.bf16.msra.mxu0 %v3381_v6  ;;  %3490 = vmatpush.bf16.msra.mxu1 %v3381_v6  ;;  %v3737_v11 = vor.u32 %v3338_v4, %v2691_v3  ;;  %v3375_v15 = vld [vmem:[%s4370_s1 + $0xb8] sm:$0xff]  ;;  %v3304_v36 = vld [vmem:[%s3560_s25 + $0x4] sm:$0xf]  ;;  %v2861_v37 = vld [vmem:[%s3560_s25 + $0xc] sm:$0xf0] }
  0x2b   : > { %3491 = vmatpush.bf16.msra.mxu2 %v3381_v6  ;;  %3492 = vmatpush.bf16.msra.mxu3 %v3381_v6  ;;  %v3350_v6 = vld [vmem:[%s3560_s25 + $0x170] sm:$0xf0]  ;;  %v3474_v16 = vld [vmem:[%s4370_s1 + $0x238] sm:$0xff]  ;;  %v3309_v38 = vld [vmem:[%s3560_s25 + $0x28] sm:$0xf0]  ;;  %v2864_v42 = vor.u32 %v3304_v36, %v2861_v37 }
  0x2c   : > { %v3739_v12 = vor.u32 %v3350_v6, %v2739_v5  ;;  %v3307_v33 = vld [vmem:[%s3560_s25 + $0x1c] sm:$0xf]  ;;  %v2859_v39 = vld [vmem:[%s3560_s25] sm:$0xf]  ;;  %v3305_v40 = vld [vmem:[%s3560_s25 + $0x8] sm:$0xf0] }
  0x2d   : > { %v2603_v61 = vld [vmem:[%s3560_s25 + $0x50] sm:$0xf]  ;;  %v3464_v1 = vld [vmem:[%s4370_s1 + $0x1e8] sm:$0xff]  ;;  %v3316_v3 = vld [vmem:[%s3560_s25 + $0x64] sm:$0xf] }
  0x2e   : > { %772 = vmatpush.bf16.msra.mxu0 %v3380_v7  ;;  %3493 = vmatpush.bf16.msra.mxu1 %v3380_v7  ;;  %v3373_v2 = vld [vmem:[%s4370_s1 + $0xa8] sm:$0xff]  ;;  %v2609_v4 = vld [vmem:[%s3560_s25 + $0x6c] sm:$0xf0]  ;;  %v3318_v6 = vld [vmem:[%s3560_s25 + $0x70] sm:$0xf0] }
  0x2f   : > { %3494 = vmatpush.bf16.msra.mxu2 %v3380_v7  ;;  %3495 = vmatpush.bf16.msra.mxu3 %v3380_v7  ;;  %v3387_v7 = vld [vmem:[%s4370_s1 + $0x100] sm:$0xff]  ;;  %v2615_v5 = vld [vmem:[%s3560_s25 + $0x68] sm:$0xf]  ;;  %v2639_v36 = vld [vmem:[%s3560_s25 + $0x98] sm:$0xf] }
  0x30   : > { %v3324_v37 = vld [vmem:[%s3560_s25 + $0xa0] sm:$0xf0] }
  0x32   : > { %773 = vmatpush.bf16.msra.mxu0 %v3379_v8  ;;  %3496 = vmatpush.bf16.msra.mxu1 %v3379_v8 }
  0x33   : > { %3497 = vmatpush.bf16.msra.mxu2 %v3379_v8  ;;  %3498 = vmatpush.bf16.msra.mxu3 %v3379_v8  ;;  %v3360_v8 = vld [vmem:[%s4370_s1 + $0x40] sm:$0xff] }
  0x35   : > { %774 = vmatmul.bf16.vlgmr.msra.gmra.mxu0 %v3603_v19  ;;  %794 = vmatmul.bf16.vlgmr.msra.gmra.mxu1 %v3605_v20 }
  0x36   : > { %814 = vmatmul.bf16.vlgmr.msra.gmra.mxu2 %v3607_v21  ;;  %834 = vmatmul.bf16.vlgmr.msra.gmra.mxu3 %v3609_v22 }
  0x37   : > { %944 = vmatpush.bf16.msrb.mxu2 %v3402_v17  ;;  %1193 = vmatpush.bf16.msrb.mxu3 %v3359_v18  ;;  %v2607_v17 = vld [vmem:[%s3560_s25 + $0x60] sm:$0xf]  ;;  %v3317_v18 = vld [vmem:[%s3560_s25 + $0x68] sm:$0xf0] }
  0x38   : > { %855 = vmatpush.bf16.msrb.mxu1 %v3394_v23  ;;  %1282 = vmatpush.bf16.msrb.mxu0 %v3367_v24  ;;  %v2655_v23 = vld [vmem:[%s3560_s25 + $0xc0] sm:$0xf]  ;;  %v3329_v24 = vld [vmem:[%s3560_s25 + $0xc8] sm:$0xf0] }
  0x3b   : > { %945 = vmatpush.bf16.msrb.mxu2 %v3401_v25  ;;  %1194 = vmatpush.bf16.msrb.mxu3 %v3358_v26  ;;  %v2703_v25 = vld [vmem:[%s3560_s25 + $0x120] sm:$0xf]  ;;  %v3341_v26 = vld [vmem:[%s3560_s25 + $0x128] sm:$0xf0] }
  0x3c   : > { %856 = vmatpush.bf16.msrb.mxu1 %v3393_v27  ;;  %1283 = vmatpush.bf16.msrb.mxu0 %v3366_v28  ;;  %v2751_v27 = vld [vmem:[%s3560_s25 + $0x180] sm:$0xf]  ;;  %v3377_v28 = vld [vmem:[%s3560_s25 + $0x188] sm:$0xf0] }
  0x3f   : > { %946 = vmatpush.bf16.msrb.mxu2 %v3400_v29  ;;  %1195 = vmatpush.bf16.msrb.mxu3 %v3357_v30  ;;  %v3765_v29 = vor.u32 %v3317_v18, %v2607_v17  ;;  %v3767_v30 = vor.u32 %v3329_v24, %v2655_v23 }
  0x40   : > { %857 = vmatpush.bf16.msrb.mxu1 %v3392_v31  ;;  %1284 = vmatpush.bf16.msrb.mxu0 %v3365_v32  ;;  %v3769_v31 = vor.u32 %v3341_v26, %v2703_v25  ;;  %v2752_v32 = vor.u32 %v3377_v28, %v2751_v27  ;;  %v3463_v25 = vld [vmem:[%s4370_s1 + $0x1e0] sm:$0xff] }
  0x43   : > { %947 = vmatpush.bf16.msrb.mxu2 %v3399_v34  ;;  %1196 = vmatpush.bf16.msrb.mxu3 %v3356_v35  ;;  %v2573_v34 = vld [vmem:[%s3560_s25 + $0x24] sm:$0xf0]  ;;  %v2579_v35 = vld [vmem:[%s3560_s25 + $0x20] sm:$0xf] }
  0x44   : > { %858 = vmatpush.bf16.msrb.mxu1 %v3391_v43  ;;  %1285 = vmatpush.bf16.msrb.mxu0 %v3364_v44  ;;  %v2576_v41 = vor.u32 %v3307_v33, %v2573_v34  ;;  %v3782_v43 = vor.u32 %v3309_v38, %v2579_v35  ;;  %v2860_v44 = vor.u32 %v3305_v40, %v2859_v39  ;;  %v3471_v33 = vld [vmem:[%s4370_s1 + $0x220] sm:$0xff]  ;;  %v3322_v34 = vld [vmem:[%s3560_s25 + $0x94] sm:$0xf] }
  0x45   : > { %779 = vmatmul.bf16.gmra.mxu0 %v3671_v47  ;;  %799 = vmatmul.bf16.gmra.mxu1 %v3673_v48  ;;  %v2633_v35 = vld [vmem:[%s3560_s25 + $0x9c] sm:$0xf0] }
  0x46   : > { %819 = vmatmul.bf16.gmra.mxu2 %v3675_v49  ;;  %839 = vmatmul.bf16.gmra.mxu3 %v3677_v50  ;;  %v2636_v40 = vor.u32 %v3322_v34, %v2633_v35 }
  0x47   : > { %948 = vmatpush.bf16.msrb.mxu2 %v3398_v45  ;;  %1197 = vmatpush.bf16.msrb.mxu3 %v3355_v46  ;;  %v3457_v45 = vld [vmem:[%s4370_s1 + $0x1b0] sm:$0xff] }
  0x48   : > { %859 = vmatpush.bf16.msrb.mxu1 %v3390_v51  ;;  %1286 = vmatpush.bf16.msrb.mxu0 %v3363_v52  ;;  %v3465_v46 = vld [vmem:[%s4370_s1 + $0x1f0] sm:$0xff] }
  0x49   : > { %v3374_v51 = vld [vmem:[%s4370_s1 + $0xb0] sm:$0xff] }
  0x4a   : > { %v3473_v52 = vld [vmem:[%s4370_s1 + $0x230] sm:$0xff] }
  0x4b   : > { %949 = vmatpush.bf16.msrb.mxu2 %v3397_v53  ;;  %1198 = vmatpush.bf16.msrb.mxu3 %v3354_v54  ;;  %v3310_v53 = vld [vmem:[%s3560_s25 + $0x34] sm:$0xf]  ;;  %v2585_v54 = vld [vmem:[%s3560_s25 + $0x3c] sm:$0xf0] }
  0x4c   : > { %860 = vmatpush.bf16.msrb.mxu1 %v3389_v55  ;;  %1287 = vmatpush.bf16.msrb.mxu0 %v3362_v56  ;;  %v2591_v55 = vld [vmem:[%s3560_s25 + $0x38] sm:$0xf]  ;;  %v3312_v56 = vld [vmem:[%s3560_s25 + $0x40] sm:$0xf0] }
  0x4f   : > { %950 = vmatpush.bf16.msrb.mxu2 %v3396_v57  ;;  %1199 = vmatpush.bf16.msrb.mxu3 %v3353_v58  ;;  %v2588_v57 = vor.u32 %v3310_v53, %v2585_v54  ;;  %v3801_v58 = vor.u32 %v3312_v56, %v2591_v55  ;;  %v3325_v53 = vld [vmem:[%s3560_s25 + $0xac] sm:$0xf]  ;;  %v2645_v54 = vld [vmem:[%s3560_s25 + $0xb4] sm:$0xf0]  ;;  %v2651_v55 = vld [vmem:[%s3560_s25 + $0xb0] sm:$0xf] }
  0x50   : > { %861 = vmatpush.bf16.msrb.mxu1 %v3388_v59  ;;  %1288 = vmatpush.bf16.msrb.mxu0 %v3361_v60  ;;  %v3313_v59 = vld [vmem:[%s3560_s25 + $0x4c] sm:$0xf]  ;;  %v2597_v60 = vld [vmem:[%s3560_s25 + $0x54] sm:$0xf0]  ;;  %v3327_v56 = vld [vmem:[%s3560_s25 + $0xb8] sm:$0xf0] }
  0x53   : > { %951 = vmatpush.bf16.msrb.mxu2 %v3395_v62  ;;  %1200 = vmatpush.bf16.msrb.mxu3 %v3352_v63  ;;  %v3315_v62 = vld [vmem:[%s3560_s25 + $0x58] sm:$0xf0]  ;;  %v2600_v63 = vor.u32 %v3313_v59, %v2597_v60  ;;  %v2648_v60 = vor.u32 %v3325_v53, %v2645_v54  ;;  %v3333_v53 = vld [vmem:[%s3560_s25 + $0xe8] sm:$0xf0] }
  0x54   : > { %862 = vmatpush.bf16.msrb.mxu1 %v3387_v7  ;;  %1289 = vmatpush.bf16.msrb.mxu0 %v3360_v8  ;;  %v3809_v0 = vor.u32 %v3315_v62, %v2603_v61  ;;  %v2612_v7 = vor.u32 %v3316_v3, %v2609_v4  ;;  %v3829_v8 = vor.u32 %v3318_v6, %v2615_v5  ;;  %v3470_v4 = vld [vmem:[%s4370_s1 + $0x218] sm:$0xff]  ;;  %v3328_v5 = vld [vmem:[%s3560_s25 + $0xc4] sm:$0xf]  ;;  %v2657_v6 = vld [vmem:[%s3560_s25 + $0xcc] sm:$0xf0] }
  0x55   : > { %784 = vmatmul.bf16.gmra.mxu0 %v3733_v9  ;;  %804 = vmatmul.bf16.gmra.mxu1 %v3735_v10  ;;  %v3901_v62 = vor.u32 %v3327_v56, %v2651_v55 }
  0x56   : > { %824 = vmatmul.bf16.gmra.mxu2 %v3737_v11  ;;  %844 = vmatmul.bf16.gmra.mxu3 %v3739_v12 }
  0x57   : > { %1973 = vmatpush.bf16.msra.mxu2 %v3458_v13  ;;  %2062 = vmatpush.bf16.msra.mxu3 %v3466_v14  ;;  %v3319_v13 = vld [vmem:[%s3560_s25 + $0x7c] sm:$0xf]  ;;  %v2621_v14 = vld [vmem:[%s3560_s25 + $0x84] sm:$0xf0] }
  0x58   : > { %1371 = vmatpush.bf16.msra.mxu1 %v3375_v15  ;;  %2151 = vmatpush.bf16.msra.mxu0 %v3474_v16  ;;  %v2627_v15 = vld [vmem:[%s3560_s25 + $0x80] sm:$0xf]  ;;  %v3321_v16 = vld [vmem:[%s3560_s25 + $0x88] sm:$0xf0]  ;;  %v2624_v17 = vor.u32 %v3319_v13, %v2621_v14  ;;  %v3330_v13 = vld [vmem:[%s3560_s25 + $0xd0] sm:$0xf0] }
  0x59   : > { %v3841_v24 = vor.u32 %v3321_v16, %v2627_v15  ;;  %v2660_v16 = vor.u32 %v3328_v5, %v2657_v6 }
  0x5b   : > { %1974 = vmatpush.bf16.msra.mxu2 %v3457_v45  ;;  %2063 = vmatpush.bf16.msra.mxu3 %v3465_v46 }
  0x5c   : > { %1372 = vmatpush.bf16.msra.mxu1 %v3374_v51  ;;  %2152 = vmatpush.bf16.msra.mxu0 %v3473_v52 }
  0x5f   : > { %2064 = vmatpush.bf16.msra.mxu3 %v3464_v1 }
  0x60   : > { %1373 = vmatpush.bf16.msra.mxu1 %v3373_v2 }
  0x63   : > { %2065 = vmatpush.bf16.msra.mxu3 %v3463_v25 }
  0x65   : > { %789 = vmatmul.bf16.gmra.mxu0 %v3765_v29  ;;  %809 = vmatmul.bf16.gmra.mxu1 %v3767_v30 }
  0x66   : > { %829 = vmatmul.bf16.gmra.mxu2 %v3769_v31  ;;  %849 = vmatmul.bf16.gmra.mxu3 %v2752_v32 }
  0x75   : > { %863 = vmatmul.bf16.vlgmr.msrb.gmra.mxu1 %v2576_v41  ;;  %1290 = vmatmul.bf16.vlgmr.msrb.gmra.mxu0 %v2864_v42 }
  0x76   : > { %952 = vmatmul.bf16.vlgmr.msrb.gmra.mxu2 %v3782_v43  ;;  %1201 = vmatmul.bf16.vlgmr.msrb.gmra.mxu3 %v2860_v44  ;;  %v3877_v44 = vor.u32 %v3324_v37, %v2639_v36  ;;  %v3331_v36 = vld [vmem:[%s3560_s25 + $0xdc] sm:$0xf]  ;;  %v2669_v37 = vld [vmem:[%s3560_s25 + $0xe4] sm:$0xf0] }
  0x77   : > { %v2672_v56 = vor.u32 %v3331_v36, %v2669_v37  ;;  %v3370_v36 = vld [vmem:[%s4370_s1 + $0x90] sm:$0xff] }
  0x78   : > { %v3469_v37 = vld [vmem:[%s4370_s1 + $0x210] sm:$0xff] }
  0x85   : > { %868 = vmatmul.bf16.gmra.mxu1 %v2588_v57  ;;  %1295 = vmatmul.bf16.gmra.mxu0 %v2576_v41 }
  0x86   : > { %957 = vmatmul.bf16.gmra.mxu2 %v3801_v58  ;;  %1206 = vmatmul.bf16.gmra.mxu3 %v3603_v19  ;;  %v3456_v19 = vld [vmem:[%s4370_s1 + $0x1a8] sm:$0xff] }
  0x87   : > { %1975 = vmatpush.bf16.msra.mxu2 %v3456_v19  ;;  %v3462_v19 = vld [vmem:[%s4370_s1 + $0x1d8] sm:$0xff] }
  0x88   : > { %2066 = vmatpush.bf16.msra.mxu3 %v3462_v19 }
  0x95   : > { %873 = vmatmul.bf16.gmra.mxu1 %v2600_v63  ;;  %1300 = vmatmul.bf16.gmra.mxu0 %v2588_v57 }
  0x96   : > { %962 = vmatmul.bf16.gmra.mxu2 %v3809_v0  ;;  %1211 = vmatmul.bf16.gmra.mxu3 %v3671_v47  ;;  %v3472_v47 = vld [vmem:[%s4370_s1 + $0x228] sm:$0xff] }
  0x97   : > { %2153 = vmatpush.bf16.msra.mxu0 %v3472_v47 }
  0x9b   : > { %2154 = vmatpush.bf16.msra.mxu0 %v3471_v33 }
  0x9f   : > { %2155 = vmatpush.bf16.msra.mxu0 %v3470_v4  ;;  %v3461_v4 = vld [vmem:[%s4370_s1 + $0x1d0] sm:$0xff] }
  0xa0   : > { %2067 = vmatpush.bf16.msra.mxu3 %v3461_v4 }
  0xa3   : > { %2156 = vmatpush.bf16.msra.mxu0 %v3469_v37 }
  0xa5   : > { %878 = vmatmul.bf16.gmra.mxu1 %v2612_v7  ;;  %1305 = vmatmul.bf16.gmra.mxu0 %v2600_v63  ;;  %v3454_v63 = vld [vmem:[%s4370_s1 + $0x198] sm:$0xff] }
  0xa6   : > { %967 = vmatmul.bf16.gmra.mxu2 %v3829_v8  ;;  %1216 = vmatmul.bf16.gmra.mxu3 %v3733_v9  ;;  %v3455_v9 = vld [vmem:[%s4370_s1 + $0x1a0] sm:$0xff] }
  0xa7   : > { %1976 = vmatpush.bf16.msra.mxu2 %v3455_v9 }
  0xab   : > { %1977 = vmatpush.bf16.msra.mxu2 %v3454_v63 }
  0xb2   : > { %v3837_v18 = vpop.f32.mrf.mxu0  ;;  %v3839_v23 = vpop.f32.mrf.mxu1 }
  0xb5   : > { %883 = vmatmul.bf16.gmra.mxu1 %v2624_v17  ;;  %1310 = vmatmul.bf16.gmra.mxu0 %v2612_v7  ;;  %v2663_v7 = vld [vmem:[%s3560_s25 + $0xc8] sm:$0xf] }
  0xb6   : > { %972 = vmatmul.bf16.gmra.mxu2 %v3841_v24  ;;  %1221 = vmatmul.bf16.gmra.mxu3 %v3765_v29  ;;  %v3372_v29 = vld [vmem:[%s4370_s1 + $0xa0] sm:$0xff]  ;;  %v3937_v25 = vor.u32 %v3330_v13, %v2663_v7 }
  0xb7   : > { %1374 = vmatpush.bf16.msra.mxu1 %v3372_v29 }
  0xb8   : > { %4378 = vst [vmem:[#allocation2_spill] sm:$0xff] %v3937_v25 }
  0xb9   : > { %v3851_v26 = vpop.f32.mrf.mxu2  ;;  %v3853_v27 = vpop.f32.mrf.mxu3 }
  0xba   : > { %v3855_v28 = vpop.f32.mrf.mxu0  ;;  %v3857_v32 = vpop.f32.mrf.mxu1 }
  0xc1   : > { %v3869_v38 = vpop.f32.mrf.mxu2  ;;  %v3871_v39 = vpop.f32.mrf.mxu3 }
  0xc2   : > { %v3873_v41 = vpop.f32.mrf.mxu0  ;;  %v3875_v42 = vpop.f32.mrf.mxu1 }
  0xc5   : > { %888 = vmatmul.bf16.gmra.mxu1 %v2636_v40  ;;  %1315 = vmatmul.bf16.gmra.mxu0 %v2624_v17 }
  0xc6   : > { %977 = vmatmul.bf16.gmra.mxu2 %v3877_v44  ;;  %1226 = vmatmul.bf16.gmra.mxu3 %v3605_v20 }
  0xc9   : > { %v3881_v45 = vpop.f32.mrf.mxu2  ;;  %v3883_v46 = vpop.f32.mrf.mxu3 }
  0xca   : > { %v3885_v51 = vpop.f32.mrf.mxu0  ;;  %v3887_v52 = vpop.f32.mrf.mxu1 }
  0xd1   : > { %v3893_v57 = vpop.f32.mrf.mxu2  ;;  %v3895_v59 = vpop.f32.mrf.mxu3 }
  0xd2   : > { %v3897_v61 = vpop.f32.mrf.mxu0  ;;  %v3899_v20 = vpop.f32.mrf.mxu1 }
  0xd5   : > { %893 = vmatmul.bf16.gmra.mxu1 %v2648_v60  ;;  %1320 = vmatmul.bf16.gmra.mxu0 %v2636_v40  ;;  %v2675_v40 = vld [vmem:[%s3560_s25 + $0xe0] sm:$0xf] }
  0xd6   : > { %982 = vmatmul.bf16.gmra.mxu2 %v3901_v62  ;;  %1231 = vmatmul.bf16.gmra.mxu3 %v3673_v48  ;;  %v3371_v48 = vld [vmem:[%s4370_s1 + $0x98] sm:$0xff] }
  0xd7   : > { %1375 = vmatpush.bf16.msra.mxu1 %v3371_v48  ;;  %v3453_v48 = vld [vmem:[%s4370_s1 + $0x190] sm:$0xff] }
  0xd8   : > { %1978 = vmatpush.bf16.msra.mxu2 %v3453_v48  ;;  %v3336_v48 = vld [vmem:[%s3560_s25 + $0x100] sm:$0xf0] }
  0xd9   : > { %v3911_v1 = vpop.f32.mrf.mxu2  ;;  %v3913_v2 = vpop.f32.mrf.mxu3 }
  0xda   : > { %v3915_v47 = vpop.f32.mrf.mxu0  ;;  %v3917_v3 = vpop.f32.mrf.mxu1 }
  0xdb   : > { %1376 = vmatpush.bf16.msra.mxu1 %v3370_v36 }
  0xe1   : > { %v3929_v14 = vpop.f32.mrf.mxu2  ;;  %v3931_v15 = vpop.f32.mrf.mxu3 }
  0xe2   : > { %v3933_v17 = vpop.f32.mrf.mxu0  ;;  %v3935_v9 = vpop.f32.mrf.mxu1 }
  0xe5   : > { %898 = vmatmul.bf16.gmra.mxu1 %v2660_v16  ;;  %1325 = vmatmul.bf16.gmra.mxu0 %v2648_v60 }
  0xe6   : > { %987 = vmatmul.bf16.gmra.mxu2 %v3937_v25  ;;  %1236 = vmatmul.bf16.gmra.mxu3 %v3735_v10  ;;  %v3957_v10 = vor.u32 %v3333_v53, %v2675_v40  ;;  %v3334_v40 = vld [vmem:[%s3560_s25 + $0xf4] sm:$0xf]  ;;  %v2681_v53 = vld [vmem:[%s3560_s25 + $0xfc] sm:$0xf0] }
  0xe8   : > { %4380 = vst [vmem:[#allocation4_spill] sm:$0xff] %v3957_v10 }
  0xe9   : > { %v3941_v29 = vpop.f32.mrf.mxu2  ;;  %v3943_v33 = vpop.f32.mrf.mxu3 }
  0xea   : > { %v3945_v34 = vpop.f32.mrf.mxu0  ;;  %v3947_v35 = vpop.f32.mrf.mxu1 }
  0xf1   : > { %v3953_v54 = vpop.f32.mrf.mxu2  ;;  %v3955_v55 = vpop.f32.mrf.mxu3 }
  0xf2   : > { %4379 = vst [vmem:[#allocation3_spill] sm:$0xff] %v3955_v55  ;;  %v864_v60 = vpop.f32.mrf.mxu1  ;;  %v1291_v63 = vpop.f32.mrf.mxu0 }
  0xf3   : > { %v865_v19 = vadd.f32 %v864_v60, %v3837_v18 }
  0xf5   : > { %903 = vmatmul.bf16.gmra.mxu1 %v2672_v56  ;;  %1330 = vmatmul.bf16.gmra.mxu0 %v2660_v16 }
  0xf6   : > { %992 = vmatmul.bf16.gmra.mxu2 %v3957_v10  ;;  %1241 = vmatmul.bf16.gmra.mxu3 %v3767_v30 }
  0xf9   : > { %v953_v18 = vpop.f32.mrf.mxu2  ;;  %v1202_v5 = vpop.f32.mrf.mxu3 }
  0xfa   : > { %v954_v6 = vadd.f32 %v953_v18, %v865_v19  ;;  %v866_v7 = vpop.f32.mrf.mxu1  ;;  %v1293_v13 = vpop.f32.mrf.mxu0  ;;  %v2687_v19 = vld [vmem:[%s3560_s25 + $0xf8] sm:$0xf] }
  0xfb   : > { %v867_v16 = vadd.f32 %v866_v7, %v3855_v28  ;;  %v2684_v28 = vor.u32 %v3334_v40, %v2681_v53  ;;  %v3981_v10 = vor.u32 %v3336_v48, %v2687_v19  ;;  %v2693_v48 = vld [vmem:[%s3560_s25 + $0x114] sm:$0xf0] }
  0xfc   : > { %v1203_v30 = vadd.f32 %v1202_v5, %v954_v6 }
  0xfd   : > { %4381 = vst [vmem:[#allocation5_spill] sm:$0xff] %v3981_v10 }
  0xfe   : > { %v3977_v60 = vadd.f32 %v1291_v63, %v1203_v30 }
 0x101   : > { %v955_v4 = vpop.f32.mrf.mxu2  ;;  %v1204_v18 = vpop.f32.mrf.mxu3 }
 0x102   : > { %v956_v5 = vadd.f32 %v955_v4, %v867_v16  ;;  %v869_v6 = vpop.f32.mrf.mxu1  ;;  %v1296_v7 = vpop.f32.mrf.mxu0 }
 0x103   : > { %v870_v25 = vadd.f32 %v869_v6, %v3873_v41  ;;  %v3337_v41 = vld [vmem:[%s3560_s25 + $0x10c] sm:$0xf] }
 0x104   : > { %v1205_v55 = vadd.f32 %v1204_v18, %v956_v5  ;;  %v2699_v18 = vld [vmem:[%s3560_s25 + $0x110] sm:$0xf] }
 0x105   : > { %908 = vmatmul.bf16.gmra.mxu1 %v2684_v28  ;;  %1335 = vmatmul.bf16.gmra.mxu0 %v2672_v56  ;;  %v3339_v56 = vld [vmem:[%s3560_s25 + $0x118] sm:$0xf0] }
 0x106   : > { %997 = vmatmul.bf16.gmra.mxu2 %v3981_v10  ;;  %1246 = vmatmul.bf16.gmra.mxu3 %v3607_v21  ;;  %v3986_v63 = vadd.f32 %v1293_v13, %v1205_v55  ;;  %v2696_v10 = vor.u32 %v3337_v41, %v2693_v48  ;;  %v3369_v41 = vld [vmem:[%s4370_s1 + $0x88] sm:$0xff]  ;;  %v3340_v48 = vld [vmem:[%s3560_s25 + $0x124] sm:$0xf] }
 0x107   : > { %1377 = vmatpush.bf16.msra.mxu1 %v3369_v41 }
 0x108   : > { %4382 = vst [vmem:[#allocation6_spill] sm:$0xff] %v3986_v63  ;;  %v3995_v63 = vor.u32 %v3339_v56, %v2699_v18  ;;  %v2705_v18 = vld [vmem:[%s3560_s25 + $0x12c] sm:$0xf0] }
 0x109   : > { %v958_v16 = vpop.f32.mrf.mxu2  ;;  %v1207_v30 = vpop.f32.mrf.mxu3 }
 0x10a   : > { %v959_v36 = vadd.f32 %v958_v16, %v870_v25  ;;  %v871_v37 = vpop.f32.mrf.mxu1  ;;  %v1298_v40 = vpop.f32.mrf.mxu0 }
 0x10b   : > { %v872_v53 = vadd.f32 %v871_v37, %v3885_v51  ;;  %v3452_v51 = vld [vmem:[%s4370_s1 + $0x188] sm:$0xff] }
 0x10c   : > { %v1208_v19 = vadd.f32 %v1207_v30, %v959_v36  ;;  %1979 = vmatpush.bf16.msra.mxu2 %v3452_v51 }
 0x10e   : > { %v3991_v4 = vadd.f32 %v1296_v7, %v1208_v19  ;;  %v3460_v7 = vld [vmem:[%s4370_s1 + $0x1c8] sm:$0xff] }
 0x10f   : > { %2068 = vmatpush.bf16.msra.mxu3 %v3460_v7 }
 0x111   : > { %v960_v5 = vpop.f32.mrf.mxu2  ;;  %v1209_v6 = vpop.f32.mrf.mxu3 }
 0x112   : > { %v961_v21 = vadd.f32 %v960_v5, %v872_v53  ;;  %v874_v55 = vpop.f32.mrf.mxu1  ;;  %v1301_v13 = vpop.f32.mrf.mxu0  ;;  %v2711_v5 = vld [vmem:[%s3560_s25 + $0x128] sm:$0xf] }
 0x113   : > { %v875_v25 = vadd.f32 %v874_v55, %v3897_v61 }
 0x114   : > { %v1210_v16 = vadd.f32 %v1209_v6, %v961_v21  ;;  %v3342_v6 = vld [vmem:[%s3560_s25 + $0x130] sm:$0xf0] }
 0x115   : > { %913 = vmatmul.bf16.gmra.mxu1 %v2696_v10  ;;  %1340 = vmatmul.bf16.gmra.mxu0 %v2684_v28  ;;  %v4021_v7 = vor.u32 %v3342_v6, %v2711_v5  ;;  %v2723_v6 = vld [vmem:[%s3560_s25 + $0x140] sm:$0xf] }
 0x116   : > { %1002 = vmatmul.bf16.gmra.mxu2 %v3995_v63  ;;  %1251 = vmatmul.bf16.gmra.mxu3 %v3675_v49  ;;  %v4006_v30 = vadd.f32 %v1298_v40, %v1210_v16  ;;  %v3468_v40 = vld [vmem:[%s4370_s1 + $0x208] sm:$0xff] }
 0x117   : > { %2157 = vmatpush.bf16.msra.mxu0 %v3468_v40 }
 0x119   : > { %v963_v61 = vpop.f32.mrf.mxu2  ;;  %v1212_v28 = vpop.f32.mrf.mxu3 }
 0x11a   : > { %v964_v36 = vadd.f32 %v963_v61, %v875_v25  ;;  %v876_v37 = vpop.f32.mrf.mxu1  ;;  %v1303_v49 = vpop.f32.mrf.mxu0 }
 0x11b   : > { %v877_v53 = vadd.f32 %v876_v37, %v3915_v47  ;;  %v2708_v47 = vor.u32 %v3340_v48, %v2705_v18  ;;  %v2717_v18 = vld [vmem:[%s3560_s25 + $0x144] sm:$0xf0] }
 0x11c   : > { %v1213_v19 = vadd.f32 %v1212_v28, %v964_v36 }
 0x11e   : > { %v4017_v56 = vadd.f32 %v1301_v13, %v1213_v19 }
 0x121   : > { %v965_v21 = vpop.f32.mrf.mxu2  ;;  %v1214_v55 = vpop.f32.mrf.mxu3 }
 0x122   : > { %v966_v25 = vadd.f32 %v965_v21, %v877_v53  ;;  %v879_v16 = vpop.f32.mrf.mxu1  ;;  %v1306_v51 = vpop.f32.mrf.mxu0 }
 0x123   : > { %v880_v61 = vadd.f32 %v879_v16, %v3933_v17  ;;  %v3343_v17 = vld [vmem:[%s3560_s25 + $0x13c] sm:$0xf] }
 0x124   : > { %v1215_v28 = vadd.f32 %v1214_v55, %v966_v25  ;;  %v2720_v25 = vor.u32 %v3343_v17, %v2717_v18  ;;  %v3368_v17 = vld [vmem:[%s4370_s1 + $0x80] sm:$0xff]  ;;  %v3346_v18 = vld [vmem:[%s3560_s25 + $0x154] sm:$0xf] }
 0x125   : > { %918 = vmatmul.bf16.gmra.mxu1 %v2708_v47  ;;  %1345 = vmatmul.bf16.gmra.mxu0 %v2696_v10  ;;  %v3345_v10 = vld [vmem:[%s3560_s25 + $0x148] sm:$0xf0] }
 0x126   : > { %1007 = vmatmul.bf16.gmra.mxu2 %v4021_v7  ;;  %1256 = vmatmul.bf16.gmra.mxu3 %v3737_v11  ;;  %v4026_v13 = vadd.f32 %v1303_v49, %v1215_v28  ;;  %v4035_v28 = vor.u32 %v3345_v10, %v2723_v6  ;;  %v2735_v10 = vld [vmem:[%s3560_s25 + $0x158] sm:$0xf] }
 0x127   : > { %1378 = vmatpush.bf16.msra.mxu1 %v3368_v17 }
 0x129   : > { %v968_v36 = vpop.f32.mrf.mxu2  ;;  %v1217_v37 = vpop.f32.mrf.mxu3 }
 0x12a   : > { %v969_v53 = vadd.f32 %v968_v36, %v880_v61  ;;  %v881_v19 = vpop.f32.mrf.mxu1  ;;  %v1308_v41 = vpop.f32.mrf.mxu0 }
 0x12b   : > { %v882_v40 = vadd.f32 %v881_v19, %v3945_v34  ;;  %v3451_v34 = vld [vmem:[%s4370_s1 + $0x180] sm:$0xff] }
 0x12c   : > { %v1218_v48 = vadd.f32 %v1217_v37, %v969_v53  ;;  %1980 = vmatpush.bf16.msra.mxu2 %v3451_v34 }
 0x12e   : > { %v4031_v5 = vadd.f32 %v1306_v51, %v1218_v48  ;;  %v3459_v51 = vld [vmem:[%s4370_s1 + $0x1c0] sm:$0xff] }
 0x12f   : > { %2069 = vmatpush.bf16.msra.mxu3 %v3459_v51 }
 0x131   : > { %v970_v21 = vpop.f32.mrf.mxu2  ;;  %v1219_v55 = vpop.f32.mrf.mxu3 }
 0x132   : > { %v971_v11 = vadd.f32 %v970_v21, %v882_v40  ;;  %v884_v49 = vpop.f32.mrf.mxu1  ;;  %v1311_v16 = vpop.f32.mrf.mxu0  ;;  %v3348_v21 = vld [vmem:[%s3560_s25 + $0x160] sm:$0xf0] }
 0x133   : > { %v885_v37 = vadd.f32 %v884_v49, %v3839_v23  ;;  %v2729_v23 = vld [vmem:[%s3560_s25 + $0x15c] sm:$0xf0] }
 0x134   : > { %v1220_v61 = vadd.f32 %v1219_v55, %v971_v11 }
 0x135   : > { %923 = vmatmul.bf16.gmra.mxu1 %v2720_v25  ;;  %1350 = vmatmul.bf16.gmra.mxu0 %v2708_v47 }
 0x136   : > { %1012 = vmatmul.bf16.gmra.mxu2 %v4035_v28  ;;  %1261 = vmatmul.bf16.gmra.mxu3 %v3769_v31  ;;  %v4045_v36 = vadd.f32 %v1308_v41, %v1220_v61  ;;  %v3467_v41 = vld [vmem:[%s4370_s1 + $0x200] sm:$0xff]  ;;  %v2732_v61 = vor.u32 %v3346_v18, %v2729_v23  ;;  %v3349_v23 = vld [vmem:[%s3560_s25 + $0x16c] sm:$0xf] }
 0x137   : > { %2158 = vmatpush.bf16.msra.mxu0 %v3467_v41 }
 0x139   : > { %v973_v47 = vpop.f32.mrf.mxu2  ;;  %v1222_v53 = vpop.f32.mrf.mxu3 }
 0x13a   : > { %v974_v31 = vadd.f32 %v973_v47, %v885_v37  ;;  %v886_v19 = vpop.f32.mrf.mxu1  ;;  %v1313_v40 = vpop.f32.mrf.mxu0  ;;  %v4061_v47 = vor.u32 %v3348_v21, %v2735_v10  ;;  %v2741_v10 = vld [vmem:[%s3560_s25 + $0x174] sm:$0xf0] }
 0x13b   : > { %v887_v55 = vadd.f32 %v886_v19, %v3857_v32 }
 0x13c   : > { %v1223_v48 = vadd.f32 %v1222_v53, %v974_v31 }
 0x13e   : > { %v4056_v6 = vadd.f32 %v1311_v16, %v1223_v48 }
 0x141   : > { %v975_v11 = vpop.f32.mrf.mxu2  ;;  %v1224_v49 = vpop.f32.mrf.mxu3 }
 0x142   : > { %v976_v34 = vadd.f32 %v975_v11, %v887_v55  ;;  %v889_v51 = vpop.f32.mrf.mxu1  ;;  %v1316_v37 = vpop.f32.mrf.mxu0  ;;  %v2747_v55 = vld [vmem:[%s3560_s25 + $0x170] sm:$0xf] }
 0x143   : > { %v890_v16 = vadd.f32 %v889_v51, %v3875_v42 }
 0x144   : > { %v1225_v53 = vadd.f32 %v1224_v49, %v976_v34 }
 0x145   : > { %928 = vmatmul.bf16.gmra.mxu1 %v2732_v61  ;;  %1355 = vmatmul.bf16.gmra.mxu0 %v2720_v25  ;;  %v3351_v25 = vld [vmem:[%s3560_s25 + $0x178] sm:$0xf0] }
 0x146   : > { %1017 = vmatmul.bf16.gmra.mxu2 %v4061_v47  ;;  %1266 = vmatmul.bf16.gmra.mxu3 %v3609_v22  ;;  %v4065_v32 = vadd.f32 %v1313_v40, %v1225_v53  ;;  %v2744_v40 = vor.u32 %v3349_v23, %v2741_v10  ;;  %v4075_v51 = vor.u32 %v3351_v25, %v2747_v55  ;;  %v3376_v10 = vld [vmem:[%s3560_s25 + $0x184] sm:$0xf]  ;;  %v2753_v55 = vld [vmem:[%s3560_s25 + $0x18c] sm:$0xf0] }
 0x148   : > { %4383 = vst [vmem:[#allocation7_spill] sm:$0xff] %v4075_v51 }
 0x149   : > { %v978_v31 = vpop.f32.mrf.mxu2  ;;  %v1227_v19 = vpop.f32.mrf.mxu3 }
 0x14a   : > { %v979_v48 = vadd.f32 %v978_v31, %v890_v16  ;;  %v891_v17 = vpop.f32.mrf.mxu1  ;;  %v1318_v41 = vpop.f32.mrf.mxu0 }
 0x14b   : > { %v892_v11 = vadd.f32 %v891_v17, %v3887_v52 }
 0x14c   : > { %v1228_v18 = vadd.f32 %v1227_v19, %v979_v48 }
 0x14e   : > { %v4070_v21 = vadd.f32 %v1316_v37, %v1228_v18 }
 0x151   : > { %v980_v49 = vpop.f32.mrf.mxu2  ;;  %v1229_v22 = vpop.f32.mrf.mxu3 }
 0x152   : > { %v981_v34 = vadd.f32 %v980_v49, %v892_v11  ;;  %v894_v53 = vpop.f32.mrf.mxu1  ;;  %v1321_v42 = vpop.f32.mrf.mxu0  ;;  %v2759_v11 = vld [vmem:[%s3560_s25 + $0x188] sm:$0xf] }
 0x153   : > { %v895_v37 = vadd.f32 %v894_v53, %v3899_v20 }
 0x154   : > { %v1230_v16 = vadd.f32 %v1229_v22, %v981_v34 }
 0x155   : > { %933 = vmatmul.bf16.gmra.mxu1 %v2744_v40  ;;  %1360 = vmatmul.bf16.gmra.mxu0 %v2732_v61  ;;  %v3378_v61 = vld [vmem:[%s3560_s25 + $0x190] sm:$0xf0] }
 0x156   : > { %1022 = vmatmul.bf16.gmra.mxu2 %v4075_v51  ;;  %1271 = vmatmul.bf16.gmra.mxu3 %v3677_v50  ;;  %v4079_v52 = vadd.f32 %v1318_v41, %v1230_v16  ;;  %v2756_v41 = vor.u32 %v3376_v10, %v2753_v55  ;;  %v2760_v53 = vor.u32 %v3378_v61, %v2759_v11  ;;  %v2867_v55 = vld [vmem:[%s3560_s25 + $0x8] sm:$0xf]  ;;  %v3306_v11 = vld [vmem:[%s3560_s25 + $0x10] sm:$0xf0]  ;;  %v3015_v61 = vld [vmem:[%s3560_s25 + $0x30] sm:$0xf] }
 0x159   : > { %v983_v31 = vpop.f32.mrf.mxu2  ;;  %v1232_v19 = vpop.f32.mrf.mxu3 }
 0x15a   : > { %v984_v48 = vadd.f32 %v983_v31, %v895_v37  ;;  %v896_v17 = vpop.f32.mrf.mxu1  ;;  %v1323_v18 = vpop.f32.mrf.mxu0 }
 0x15b   : > { %v897_v49 = vadd.f32 %v896_v17, %v3917_v3 }
 0x15c   : > { %v1233_v23 = vadd.f32 %v1232_v19, %v984_v48 }
 0x15e   : > { %v4084_v25 = vadd.f32 %v1321_v42, %v1233_v23 }
 0x161   : > { %v985_v22 = vpop.f32.mrf.mxu2  ;;  %v1234_v50 = vpop.f32.mrf.mxu3 }
 0x162   : > { %v986_v34 = vadd.f32 %v985_v22, %v897_v49  ;;  %v899_v16 = vpop.f32.mrf.mxu1  ;;  %v1326_v20 = vpop.f32.mrf.mxu0  ;;  %v3405_v49 = vld [vmem:[%s3560_s25 + $0x40] sm:$0xf0] }
 0x163   : > { %v900_v42 = vadd.f32 %v899_v16, %v3935_v9  ;;  %v2868_v16 = vor.u32 %v3306_v11, %v2867_v55 }
 0x164   : > { %v1235_v37 = vadd.f32 %v1234_v50, %v986_v34  ;;  %v3403_v50 = vld [vmem:[%s3560_s25 + $0x34] sm:$0xf] }
 0x165   : > { %938 = vmatmul.bf16.gmra.mxu1 %v2756_v41  ;;  %1365 = vmatmul.bf16.gmra.mxu0 %v2744_v40  ;;  %v3023_v40 = vld [vmem:[%s3560_s25 + $0x38] sm:$0xf] }
 0x166   : > { %1027 = vmatmul.bf16.gmra.mxu2 %v2760_v53  ;;  %1276 = vmatmul.bf16.gmra.mxu3 %v3739_v12  ;;  %v4090_v3 = vadd.f32 %v1323_v18, %v1235_v37  ;;  %v3404_v12 = vld [vmem:[%s3560_s25 + $0x38] sm:$0xf0]  ;;  %v3017_v18 = vld [vmem:[%s3560_s25 + $0x3c] sm:$0xf0]  ;;  %v3024_v53 = vor.u32 %v3405_v49, %v3023_v40  ;;  %v3027_v49 = vld [vmem:[%s3560_s25 + $0x48] sm:$0xf] }
 0x169   : > { %v988_v31 = vpop.f32.mrf.mxu2  ;;  %v1237_v19 = vpop.f32.mrf.mxu3 }
 0x16a   : > { %v989_v48 = vadd.f32 %v988_v31, %v900_v42  ;;  %v901_v17 = vpop.f32.mrf.mxu1  ;;  %v1328_v23 = vpop.f32.mrf.mxu0 }
 0x16b   : > { %v902_v41 = vadd.f32 %v901_v17, %v3947_v35 }
 0x16c   : > { %v1238_v10 = vadd.f32 %v1237_v19, %v989_v48  ;;  %v3016_v19 = vor.u32 %v3404_v12, %v3015_v61  ;;  %v3020_v48 = vor.u32 %v3403_v50, %v3017_v18  ;;  %v3035_v12 = vld [vmem:[%s3560_s25 + $0x50] sm:$0xf]  ;;  %v3408_v50 = vld [vmem:[%s3560_s25 + $0x58] sm:$0xf0] }
 0x16e   : > { %v4098_v22 = vadd.f32 %v1326_v20, %v1238_v10 }
 0x171   : > { %v990_v34 = vpop.f32.mrf.mxu2  ;;  %v1239_v9 = vpop.f32.mrf.mxu3 }
 0x172   : > { %v991_v37 = vadd.f32 %v990_v34, %v902_v41  ;;  %v904_v42 = vpop.f32.mrf.mxu1  ;;  %v1331_v31 = vpop.f32.mrf.mxu0  ;;  %v3407_v41 = vld [vmem:[%s3560_s25 + $0x50] sm:$0xf0]  ;;  %v3406_v34 = vld [vmem:[%s3560_s25 + $0x4c] sm:$0xf] }
 0x173   : > { %v905_v20 = vadd.f32 %v904_v42, %v3851_v26 }
 0x174   : > { %v1240_v51 = vadd.f32 %v1239_v9, %v991_v37  ;;  %v3029_v9 = vld [vmem:[%s3560_s25 + $0x54] sm:$0xf0] }
 0x175   : > { %1379 = vmatmul.bf16.vlgmr.msra.gmra.mxu1 %v2868_v16  ;;  %2159 = vmatmul.bf16.vlgmr.msra.gmra.mxu0 %v3024_v53  ;;  %v3036_v53 = vor.u32 %v3408_v50, %v3035_v12  ;;  %v3039_v12 = vld [vmem:[%s3560_s25 + $0x60] sm:$0xf]  ;;  %v3047_v50 = vld [vmem:[%s3560_s25 + $0x68] sm:$0xf] }
 0x176   : > { %1981 = vmatmul.bf16.vlgmr.msra.gmra.mxu2 %v3016_v19  ;;  %2070 = vmatmul.bf16.vlgmr.msra.gmra.mxu3 %v3020_v48  ;;  %v4104_v35 = vadd.f32 %v1328_v23, %v1240_v51  ;;  %v3028_v19 = vor.u32 %v3407_v41, %v3027_v49  ;;  %v3032_v48 = vor.u32 %v3406_v34, %v3029_v9  ;;  %v3411_v41 = vld [vmem:[%s3560_s25 + $0x70] sm:$0xf0]  ;;  %v3410_v34 = vld [vmem:[%s3560_s25 + $0x68] sm:$0xf0]  ;;  %v3409_v9 = vld [vmem:[%s3560_s25 + $0x64] sm:$0xf] }
 0x179   : > { %v993_v17 = vpop.f32.mrf.mxu2  ;;  %v1242_v10 = vpop.f32.mrf.mxu3 }
 0x17a   : > { %v994_v55 = vadd.f32 %v993_v17, %v905_v20  ;;  %v906_v11 = vpop.f32.mrf.mxu1  ;;  %v1333_v61 = vpop.f32.mrf.mxu0 }
 0x17b   : > { %v907_v16 = vadd.f32 %v906_v11, %v3869_v38 }
 0x17c   : > { %v1243_v40 = vadd.f32 %v1242_v10, %v994_v55 }
 0x17e   : > { %v4110_v18 = vadd.f32 %v1331_v31, %v1243_v40 }
 0x181   : > { %v995_v51 = vpop.f32.mrf.mxu2  ;;  %v1244_v23 = vpop.f32.mrf.mxu3 }
 0x182   : > { %v996_v26 = vadd.f32 %v995_v51, %v907_v16  ;;  %v909_v37 = vpop.f32.mrf.mxu1  ;;  %v1336_v42 = vpop.f32.mrf.mxu0  ;;  %v3041_v16 = vld [vmem:[%s3560_s25 + $0x6c] sm:$0xf0] }
 0x183   : > { %v910_v31 = vadd.f32 %v909_v37, %v3881_v45 }
 0x184   : > { %v1245_v20 = vadd.f32 %v1244_v23, %v996_v26 }
 0x185   : > { %1384 = vmatmul.bf16.gmra.mxu1 %v3782_v43  ;;  %2164 = vmatmul.bf16.gmra.mxu0 %v3036_v53  ;;  %v3048_v53 = vor.u32 %v3411_v41, %v3047_v50  ;;  %v3059_v50 = vld [vmem:[%s3560_s25 + $0x80] sm:$0xf]  ;;  %v3414_v41 = vld [vmem:[%s3560_s25 + $0x88] sm:$0xf0] }
 0x186   : > { %1986 = vmatmul.bf16.gmra.mxu2 %v3028_v19  ;;  %2075 = vmatmul.bf16.gmra.mxu3 %v3032_v48  ;;  %v4117_v38 = vadd.f32 %v1333_v61, %v1245_v20  ;;  %v3040_v19 = vor.u32 %v3410_v34, %v3039_v12  ;;  %v3044_v48 = vor.u32 %v3409_v9, %v3041_v16  ;;  %v3051_v12 = vld [vmem:[%s3560_s25 + $0x78] sm:$0xf]  ;;  %v3413_v34 = vld [vmem:[%s3560_s25 + $0x80] sm:$0xf0]  ;;  %v3412_v9 = vld [vmem:[%s3560_s25 + $0x7c] sm:$0xf] }
 0x187   : > { %v3053_v16 = vld [vmem:[%s3560_s25 + $0x84] sm:$0xf0] }
 0x189   : > { %v998_v17 = vpop.f32.mrf.mxu2  ;;  %v1247_v10 = vpop.f32.mrf.mxu3 }
 0x18a   : > { %v999_v55 = vadd.f32 %v998_v17, %v910_v31  ;;  %v911_v11 = vpop.f32.mrf.mxu1  ;;  %v1338_v40 = vpop.f32.mrf.mxu0 }
 0x18b   : > { %v912_v51 = vadd.f32 %v911_v11, %v3893_v57 }
 0x18c   : > { %v1248_v49 = vadd.f32 %v1247_v10, %v999_v55 }
 0x18e   : > { %v4123_v43 = vadd.f32 %v1336_v42, %v1248_v49 }
 0x191   : > { %v1000_v61 = vpop.f32.mrf.mxu2  ;;  %v1249_v23 = vpop.f32.mrf.mxu3 }
 0x192   : > { %v1001_v45 = vadd.f32 %v1000_v61, %v912_v51  ;;  %v914_v26 = vpop.f32.mrf.mxu1  ;;  %v1341_v37 = vpop.f32.mrf.mxu0 }
 0x193   : > { %v915_v42 = vadd.f32 %v914_v26, %v3911_v1  ;;  %v3052_v26 = vor.u32 %v3413_v34, %v3051_v12  ;;  %v3071_v12 = vld [vmem:[%s3560_s25 + $0x98] sm:$0xf]  ;;  %v3415_v34 = vld [vmem:[%s3560_s25 + $0x94] sm:$0xf] }
 0x194   : > { %v1250_v20 = vadd.f32 %v1249_v23, %v1001_v45  ;;  %v3060_v23 = vor.u32 %v3414_v41, %v3059_v50  ;;  %v3417_v50 = vld [vmem:[%s3560_s25 + $0xa0] sm:$0xf0]  ;;  %v3416_v41 = vld [vmem:[%s3560_s25 + $0x98] sm:$0xf0] }
 0x195   : > { %1389 = vmatmul.bf16.gmra.mxu1 %v3801_v58  ;;  %2169 = vmatmul.bf16.gmra.mxu0 %v3048_v53 }
 0x196   : > { %1991 = vmatmul.bf16.gmra.mxu2 %v3040_v19  ;;  %2080 = vmatmul.bf16.gmra.mxu3 %v3044_v48  ;;  %v4130_v57 = vadd.f32 %v1338_v40, %v1250_v20  ;;  %v3056_v19 = vor.u32 %v3412_v9, %v3053_v16  ;;  %v3065_v9 = vld [vmem:[%s3560_s25 + $0x9c] sm:$0xf0] }
 0x199   : > { %v1003_v31 = vpop.f32.mrf.mxu2  ;;  %v1252_v17 = vpop.f32.mrf.mxu3 }
 0x19a   : > { %v1004_v10 = vadd.f32 %v1003_v31, %v915_v42  ;;  %v916_v55 = vpop.f32.mrf.mxu1  ;;  %v1343_v11 = vpop.f32.mrf.mxu0 }
 0x19b   : > { %v917_v51 = vadd.f32 %v916_v55, %v3929_v14 }
 0x19c   : > { %v1253_v49 = vadd.f32 %v1252_v17, %v1004_v10 }
 0x19e   : > { %v4136_v58 = vadd.f32 %v1341_v37, %v1253_v49  ;;  %v3063_v49 = vld [vmem:[%s3560_s25 + $0x90] sm:$0xf] }
 0x1a1   : > { %v1005_v40 = vpop.f32.mrf.mxu2  ;;  %v1254_v61 = vpop.f32.mrf.mxu3 }
 0x1a2   : > { %v1006_v1 = vadd.f32 %v1005_v40, %v917_v51  ;;  %v919_v53 = vpop.f32.mrf.mxu1  ;;  %v1346_v45 = vpop.f32.mrf.mxu0  ;;  %v3072_v40 = vor.u32 %v3417_v50, %v3071_v12  ;;  %v3419_v12 = vld [vmem:[%s3560_s25 + $0xb0] sm:$0xf0]  ;;  %v3418_v50 = vld [vmem:[%s3560_s25 + $0xac] sm:$0xf] }
 0x1a3   : > { %v920_v37 = vadd.f32 %v919_v53, %v3941_v29  ;;  %v3068_v53 = vor.u32 %v3415_v34, %v3065_v9 }
 0x1a4   : > { %v1255_v48 = vadd.f32 %v1254_v61, %v1006_v1  ;;  %v3064_v1 = vor.u32 %v3416_v41, %v3063_v49  ;;  %v3420_v49 = vld [vmem:[%s3560_s25 + $0xb8] sm:$0xf0]  ;;  %v3077_v41 = vld [vmem:[%s3560_s25 + $0xb4] sm:$0xf0] }
 0x1a5   : > { %1394 = vmatmul.bf16.gmra.mxu1 %v3809_v0  ;;  %2174 = vmatmul.bf16.gmra.mxu0 %v3060_v23 }
 0x1a6   : > { %1996 = vmatmul.bf16.gmra.mxu2 %v3052_v26  ;;  %2085 = vmatmul.bf16.gmra.mxu3 %v3056_v19  ;;  %v4143_v14 = vadd.f32 %v1343_v11, %v1255_v48 }
 0x1a9   : > { %v1008_v20 = vpop.f32.mrf.mxu2  ;;  %v1257_v42 = vpop.f32.mrf.mxu3 }
 0x1aa   : > { %v1009_v31 = vadd.f32 %v1008_v20, %v920_v37  ;;  %v921_v17 = vpop.f32.mrf.mxu1  ;;  %v1348_v10 = vpop.f32.mrf.mxu0 }
 0x1ab   : > { %v922_v16 = vadd.f32 %v921_v17, %v3953_v54  ;;  %v3075_v17 = vld [vmem:[%s3560_s25 + $0xa8] sm:$0xf] }
 0x1ac   : > { %v1258_v55 = vadd.f32 %v1257_v42, %v1009_v31 }
 0x1ae   : > { %v4149_v0 = vadd.f32 %v1346_v45, %v1258_v55  ;;  %v3083_v55 = vld [vmem:[%s3560_s25 + $0xb0] sm:$0xf] }
 0x1b1   : > { %v1010_v11 = vpop.f32.mrf.mxu2  ;;  %v1259_v51 = vpop.f32.mrf.mxu3 }
 0x1b2   : > { %v1011_v29 = vadd.f32 %v1010_v11, %v922_v16  ;;  %v924_v61 = vpop.f32.mrf.mxu1  ;;  %v1351_v23 = vpop.f32.mrf.mxu0  ;;  %v3084_v16 = vor.u32 %v3420_v49, %v3083_v55  ;;  %v3421_v55 = vld [vmem:[%s3560_s25 + $0xc4] sm:$0xf]  ;;  %v3089_v49 = vld [vmem:[%s3560_s25 + $0xcc] sm:$0xf0] }
 0x1b3   : > { %v925_v45 = vadd.f32 %v924_v61, %v3853_v27 }
 0x1b4   : > { %v1260_v26 = vadd.f32 %v1259_v51, %v1011_v29  ;;  %v3080_v29 = vor.u32 %v3418_v50, %v3077_v41 }
 0x1b5   : > { %1399 = vmatmul.bf16.gmra.mxu1 %v3829_v8  ;;  %2179 = vmatmul.bf16.gmra.mxu0 %v3072_v40  ;;  %v3076_v40 = vor.u32 %v3419_v12, %v3075_v17  ;;  %v3422_v17 = vld [vmem:[%s3560_s25 + $0xc8] sm:$0xf0] }
 0x1b6   : > { %2001 = vmatmul.bf16.gmra.mxu2 %v3064_v1  ;;  %2090 = vmatmul.bf16.gmra.mxu3 %v3068_v53  ;;  %v4156_v54 = vadd.f32 %v1348_v10, %v1260_v26 }
 0x1b9   : > { %v1013_v19 = vpop.f32.mrf.mxu2  ;;  %v1262_v48 = vpop.f32.mrf.mxu3 }
 0x1ba   : > { %v1014_v37 = vadd.f32 %v1013_v19, %v925_v45  ;;  %v926_v20 = vpop.f32.mrf.mxu1  ;;  %v1353_v42 = vpop.f32.mrf.mxu0 }
 0x1bb   : > { %v927_v34 = vadd.f32 %v926_v20, %v3871_v39  ;;  %v3095_v20 = vld [vmem:[%s3560_s25 + $0xc8] sm:$0xf] }
 0x1bc   : > { %v1263_v31 = vadd.f32 %v1262_v48, %v1014_v37  ;;  %v3087_v37 = vld [vmem:[%s3560_s25 + $0xc0] sm:$0xf] }
 0x1be   : > { %v4162_v8 = vadd.f32 %v1351_v23, %v1263_v31  ;;  %v3423_v31 = vld [vmem:[%s3560_s25 + $0xd0] sm:$0xf0] }
 0x1bf   : > { %v3096_v41 = vor.u32 %v3423_v31, %v3095_v20  ;;  %v3101_v20 = vld [vmem:[%s3560_s25 + $0xe4] sm:$0xf0] }
 0x1c1   : > { %v1015_v10 = vpop.f32.mrf.mxu2  ;;  %v1264_v9 = vpop.f32.mrf.mxu3 }
 0x1c2   : > { %v1016_v27 = vadd.f32 %v1015_v10, %v927_v34  ;;  %v929_v11 = vpop.f32.mrf.mxu1  ;;  %v1356_v51 = vpop.f32.mrf.mxu0 }
 0x1c3   : > { %v930_v23 = vadd.f32 %v929_v11, %v3883_v46 }
 0x1c4   : > { %v1265_v61 = vadd.f32 %v1264_v9, %v1016_v27  ;;  %v3088_v9 = vor.u32 %v3422_v17, %v3087_v37  ;;  %v3424_v37 = vld [vmem:[%s3560_s25 + $0xdc] sm:$0xf] }
 0x1c5   : > { %1404 = vmatmul.bf16.gmra.mxu1 %v3841_v24  ;;  %2184 = vmatmul.bf16.gmra.mxu0 %v3084_v16  ;;  %v3092_v16 = vor.u32 %v3421_v55, %v3089_v49 }
 0x1c6   : > { %2006 = vmatmul.bf16.gmra.mxu2 %v3076_v40  ;;  %2095 = vmatmul.bf16.gmra.mxu3 %v3080_v29  ;;  %v4169_v39 = vadd.f32 %v1353_v42, %v1265_v61 }
 0x1c9   : > { %v1018_v1 = vpop.f32.mrf.mxu2  ;;  %v1267_v53 = vpop.f32.mrf.mxu3 }
 0x1ca   : > { %v1019_v26 = vadd.f32 %v1018_v1, %v930_v23  ;;  %v931_v45 = vpop.f32.mrf.mxu1  ;;  %v1358_v19 = vpop.f32.mrf.mxu0 }
 0x1cb   : > { %v932_v12 = vadd.f32 %v931_v45, %v3895_v59  ;;  %v3426_v45 = vld [vmem:[%s3560_s25 + $0xe8] sm:$0xf0] }
 0x1cc   : > { %v1268_v48 = vadd.f32 %v1267_v53, %v1019_v26  ;;  %v3099_v53 = vld [vmem:[%s3560_s25 + $0xd8] sm:$0xf]  ;;  %v3107_v26 = vld [vmem:[%s3560_s25 + $0xe0] sm:$0xf] }
 0x1cd   : > { %v3108_v55 = vor.u32 %v3426_v45, %v3107_v26  ;;  %v4384_v26 = vld [vmem:[#allocation3_spill] sm:$0xff] }
 0x1ce   : > { %v4175_v24 = vadd.f32 %v1356_v51, %v1268_v48  ;;  %v3425_v48 = vld [vmem:[%s3560_s25 + $0xe0] sm:$0xf0] }
 0x1d1   : > { %v1020_v42 = vpop.f32.mrf.mxu2  ;;  %v1269_v50 = vpop.f32.mrf.mxu3 }
 0x1d2   : > { %v1021_v46 = vadd.f32 %v1020_v42, %v932_v12  ;;  %v934_v34 = vpop.f32.mrf.mxu1  ;;  %v1361_v10 = vpop.f32.mrf.mxu0  ;;  %v3100_v42 = vor.u32 %v3425_v48, %v3099_v53  ;;  %v3113_v53 = vld [vmem:[%s3560_s25 + $0xfc] sm:$0xf0] }
 0x1d3   : > { %v935_v11 = vadd.f32 %v934_v34, %v3913_v2 }
 0x1d4   : > { %v1270_v27 = vadd.f32 %v1269_v50, %v1021_v46  ;;  %v3104_v50 = vor.u32 %v3424_v37, %v3101_v20 }
 0x1d5   : > { %1409 = vmatmul.bf16.gmra.mxu1 %v3877_v44  ;;  %2189 = vmatmul.bf16.gmra.mxu0 %v3096_v41 }
 0x1d6   : > { %2011 = vmatmul.bf16.gmra.mxu2 %v3088_v9  ;;  %2100 = vmatmul.bf16.gmra.mxu3 %v3092_v16  ;;  %v4182_v59 = vadd.f32 %v1358_v19, %v1270_v27 }
 0x1d9   : > { %v1023_v51 = vpop.f32.mrf.mxu2  ;;  %v1272_v40 = vpop.f32.mrf.mxu3 }
 0x1da   : > { %v1024_v29 = vadd.f32 %v1023_v51, %v935_v11  ;;  %v936_v61 = vpop.f32.mrf.mxu1  ;;  %v1363_v23 = vpop.f32.mrf.mxu0  ;;  %v3111_v51 = vld [vmem:[%s3560_s25 + $0xf0] sm:$0xf] }
 0x1db   : > { %v937_v31 = vadd.f32 %v936_v61, %v3931_v15  ;;  %v3428_v61 = vld [vmem:[%s3560_s25 + $0xf8] sm:$0xf0] }
 0x1dc   : > { %v1273_v1 = vadd.f32 %v1272_v40, %v1024_v29  ;;  %v3119_v40 = vld [vmem:[%s3560_s25 + $0xf8] sm:$0xf]  ;;  %v3429_v29 = vld [vmem:[%s3560_s25 + $0x100] sm:$0xf0] }
 0x1dd   : > { %v3120_v37 = vor.u32 %v3429_v29, %v3119_v40  ;;  %v3432_v40 = vld [vmem:[%s3560_s25 + $0x118] sm:$0xf0]  ;;  %v3430_v29 = vld [vmem:[%s3560_s25 + $0x10c] sm:$0xf] }
 0x1de   : > { %v4188_v44 = vadd.f32 %v1361_v10, %v1273_v1  ;;  %v3427_v1 = vld [vmem:[%s3560_s25 + $0xf4] sm:$0xf] }
 0x1e1   : > { %v1025_v19 = vpop.f32.mrf.mxu2  ;;  %v1274_v17 = vpop.f32.mrf.mxu3 }
 0x1e2   : > { %v1026_v2 = vadd.f32 %v1025_v19, %v937_v31  ;;  %v939_v49 = vpop.f32.mrf.mxu1  ;;  %v1366_v12 = vpop.f32.mrf.mxu0  ;;  %v3112_v19 = vor.u32 %v3428_v61, %v3111_v51  ;;  %v3131_v51 = vld [vmem:[%s3560_s25 + $0x110] sm:$0xf]  ;;  %v3125_v61 = vld [vmem:[%s3560_s25 + $0x114] sm:$0xf0] }
 0x1e3   : > { %v940_v46 = vadd.f32 %v939_v49, %v3943_v33 }
 0x1e4   : > { %v1275_v41 = vadd.f32 %v1274_v17, %v1026_v2  ;;  %v3116_v17 = vor.u32 %v3427_v1, %v3113_v53  ;;  %v4385_v2 = vld [vmem:[#allocation2_spill] sm:$0xff] }
 0x1e5   : > { %1414 = vmatmul.bf16.gmra.mxu1 %v3901_v62  ;;  %2194 = vmatmul.bf16.gmra.mxu0 %v3108_v55 }
 0x1e6   : > { %2016 = vmatmul.bf16.gmra.mxu2 %v3100_v42  ;;  %2105 = vmatmul.bf16.gmra.mxu3 %v3104_v50  ;;  %v4195_v15 = vadd.f32 %v1363_v23, %v1275_v41 }
 0x1e9   : > { %v1028_v34 = vpop.f32.mrf.mxu2  ;;  %v1277_v10 = vpop.f32.mrf.mxu3 }
 0x1ea   : > { %v1029_v9 = vadd.f32 %v1028_v34, %v940_v46  ;;  %v941_v16 = vpop.f32.mrf.mxu1  ;;  %v1368_v27 = vpop.f32.mrf.mxu0 }
 0x1eb   : > { %v942_v45 = vadd.f32 %v941_v16, %v4384_v26 }
 0x1ec   : > { %v1278_v11 = vadd.f32 %v1277_v10, %v1029_v9  ;;  %v4214_v9 = vld [vmem:[%s4371_s2] ss:$0 sm:$0xff] }
 0x1ee   : > { %v4201_v62 = vadd.f32 %v1366_v12, %v1278_v11  ;;  %v3123_v11 = vld [vmem:[%s3560_s25 + $0x108] sm:$0xf] }
 0x1f1   : > { %v1030_v23 = vpop.f32.mrf.mxu2  ;;  %v1279_v48 = vpop.f32.mrf.mxu3 }
 0x1f2   : > { %v1031_v33 = vadd.f32 %v1030_v23, %v942_v45  ;;  %v1380_v20 = vpop.f32.mrf.mxu1  ;;  %v2160_v31 = vpop.f32.mrf.mxu0  ;;  %v3132_v45 = vor.u32 %v3432_v40, %v3131_v51 }
 0x1f3   : > { %v1381_v34 = vadd.f32 %v1380_v20, %v3977_v60  ;;  %v4386_v20 = vld [vmem:[#allocation6_spill] sm:$0xff] }
 0x1f4   : > { %v1280_v55 = vadd.f32 %v1279_v48, %v1031_v33  ;;  %v3128_v33 = vor.u32 %v3430_v29, %v3125_v61  ;;  %v3434_v61 = vld [vmem:[%s3560_s25 + $0x128] sm:$0xf0] }
 0x1f5   : > { %1419 = vmatmul.bf16.gmra.mxu1 %v4385_v2  ;;  %2199 = vmatmul.bf16.gmra.mxu0 %v3120_v37 }
 0x1f6   : > { %2021 = vmatmul.bf16.gmra.mxu2 %v3112_v19  ;;  %2110 = vmatmul.bf16.gmra.mxu3 %v3116_v17  ;;  %v4208_v49 = vadd.f32 %v1368_v27, %v1280_v55  ;;  %v3431_v27 = vld [vmem:[%s3560_s25 + $0x110] sm:$0xf0] }
 0x1f7   : > { %v3124_v37 = vor.u32 %v3431_v27, %v3123_v11  ;;  %v4387_v17 = vld [vmem:[#allocation4_spill] sm:$0xff]  ;;  %v3135_v27 = vld [vmem:[%s3560_s25 + $0x120] sm:$0xf] }
 0x1f9   : > { %v1982_v12 = vpop.f32.mrf.mxu2  ;;  %v2071_v42 = vpop.f32.mrf.mxu3 }
 0x1fa   : > { %v2072_v50 = vadd.f32 %v2071_v42, %v1982_v12  ;;  %v1382_v41 = vpop.f32.mrf.mxu1  ;;  %v2162_v46 = vpop.f32.mrf.mxu0 }
 0x1fc   : > { %v2161_v10 = vadd.f32 %v2160_v31, %v2072_v50  ;;  %v1383_v31 = vadd.f32 %v1382_v41, %v4386_v20  ;;  %v3136_v20 = vor.u32 %v3434_v61, %v3135_v27 }
 0x1fe   : > { %v2240_v16 = vadd.f32 %v2161_v10, %v1381_v34 }
 0x200   : > { %v2276_v1 = vadd.f32 %v4214_v9, %v2240_v16 }
 0x201   : > { %v1984_v53 = vpop.f32.mrf.mxu2  ;;  %v2073_v26 = vpop.f32.mrf.mxu3 }
 0x202   : > { %2308 = vst [vmem:[%s3555_s22] sm:$0xff] %v2276_v1  ;;  %v2074_v60 = vadd.f32 %v2073_v26, %v1984_v53  ;;  %v1385_v23 = vpop.f32.mrf.mxu1  ;;  %v2165_v48 = vpop.f32.mrf.mxu0  ;;  %v2378_v50 = vmul.f32 %v2276_v1, %v2276_v1  ;;  %v3143_v53 = vld [vmem:[%s3560_s25 + $0x128] sm:$0xf]  ;;  %v3435_v26 = vld [vmem:[%s3560_s25 + $0x130] sm:$0xf0] }
 0x203   : > { %v1386_v51 = vadd.f32 %v1385_v23, %v3991_v4 }
 0x204   : > { %v2163_v19 = vadd.f32 %v2162_v46, %v2074_v60  ;;  %v3137_v60 = vld [vmem:[%s3560_s25 + $0x12c] sm:$0xf0] }
 0x205   : > { %1424 = vmatmul.bf16.gmra.mxu1 %v4387_v17  ;;  %2204 = vmatmul.bf16.gmra.mxu0 %v3132_v45  ;;  %v3433_v45 = vld [vmem:[%s3560_s25 + $0x124] sm:$0xf] }
 0x206   : > { %v2241_v55 = vadd.f32 %v2163_v19, %v1383_v31  ;;  %2026 = vmatmul.bf16.gmra.mxu2 %v3124_v37  ;;  %2115 = vmatmul.bf16.gmra.mxu3 %v3128_v33  ;;  %v3144_v31 = vor.u32 %v3435_v26, %v3143_v53  ;;  %v3147_v53 = vld [vmem:[%s3560_s25 + $0x138] sm:$0xf] }
 0x208   : > { %v2277_v2 = vadd.f32 %v4214_v9, %v2241_v55 }
 0x209   : > { %v1987_v12 = vpop.f32.mrf.mxu2  ;;  %v2076_v42 = vpop.f32.mrf.mxu3 }
 0x20a   : > { %2309 = vst [vmem:[%s3555_s22 + $0x8] sm:$0xff] %v2277_v2  ;;  %v2341_v41 = vadd.f32 %v2277_v2, %v2276_v1  ;;  %v2379_v46 = vmul.f32 %v2277_v2, %v2277_v2  ;;  %v2077_v34 = vadd.f32 %v2076_v42, %v1987_v12  ;;  %v1387_v10 = vpop.f32.mrf.mxu1  ;;  %v2167_v16 = vpop.f32.mrf.mxu0 }
 0x20b   : > { %v1388_v12 = vadd.f32 %v1387_v10, %v4006_v30 }
 0x20c   : > { %v2410_v11 = vadd.f32 %v2379_v46, %v2378_v50  ;;  %v2166_v40 = vadd.f32 %v2165_v48, %v2077_v34  ;;  %v3140_v48 = vor.u32 %v3433_v45, %v3137_v60  ;;  %v4388_v50 = vld [vmem:[#allocation5_spill] sm:$0xff]  ;;  %v3437_v45 = vld [vmem:[%s3560_s25 + $0x140] sm:$0xf0]  ;;  %v3155_v60 = vld [vmem:[%s3560_s25 + $0x140] sm:$0xf] }
 0x20e   : > { %v2242_v29 = vadd.f32 %v2166_v40, %v1386_v51 }
 0x210   : > { %v2278_v37 = vadd.f32 %v4214_v9, %v2242_v29 }
 0x211   : > { %v1989_v33 = vpop.f32.mrf.mxu2  ;;  %v2078_v1 = vpop.f32.mrf.mxu3 }
 0x212   : > { %2310 = vst [vmem:[%s3555_s22 + $0x10] sm:$0xff] %v2278_v37  ;;  %v2342_v19 = vadd.f32 %v2341_v41, %v2278_v37  ;;  %v2380_v17 = vmul.f32 %v2278_v37, %v2278_v37  ;;  %v2079_v55 = vadd.f32 %v2078_v1, %v1989_v33  ;;  %v1390_v4 = vpop.f32.mrf.mxu1  ;;  %v2170_v23 = vpop.f32.mrf.mxu0  ;;  %v3438_v37 = vld [vmem:[%s3560_s25 + $0x148] sm:$0xf0]  ;;  %v3436_v33 = vld [vmem:[%s3560_s25 + $0x13c] sm:$0xf] }
 0x213   : > { %v1391_v29 = vadd.f32 %v1390_v4, %v4017_v56  ;;  %v3149_v1 = vld [vmem:[%s3560_s25 + $0x144] sm:$0xf0] }
 0x214   : > { %v2411_v2 = vadd.f32 %v2410_v11, %v2380_v17  ;;  %v2168_v42 = vadd.f32 %v2167_v16, %v2079_v55  ;;  %v3148_v17 = vor.u32 %v3437_v45, %v3147_v53  ;;  %v3156_v55 = vor.u32 %v3438_v37, %v3155_v60  ;;  %v3167_v45 = vld [vmem:[%s3560_s25 + $0x158] sm:$0xf]  ;;  %v3441_v60 = vld [vmem:[%s3560_s25 + $0x160] sm:$0xf0]  ;;  %v3439_v37 = vld [vmem:[%s3560_s25 + $0x154] sm:$0xf] }
 0x215   : > { %1429 = vmatmul.bf16.gmra.mxu1 %v4388_v50  ;;  %2209 = vmatmul.bf16.gmra.mxu0 %v3144_v31 }
 0x216   : > { %v2243_v46 = vadd.f32 %v2168_v42, %v1388_v12  ;;  %2031 = vmatmul.bf16.gmra.mxu2 %v3136_v20  ;;  %2120 = vmatmul.bf16.gmra.mxu3 %v3140_v48 }
 0x218   : > { %v2279_v41 = vadd.f32 %v4214_v9, %v2243_v46 }
 0x219   : > { %v1992_v34 = vpop.f32.mrf.mxu2  ;;  %v2081_v51 = vpop.f32.mrf.mxu3 }
 0x21a   : > { %2311 = vst [vmem:[%s3555_s22 + $0x18] sm:$0xff] %v2279_v41  ;;  %v2343_v11 = vadd.f32 %v2342_v19, %v2279_v41  ;;  %v2381_v30 = vmul.f32 %v2279_v41, %v2279_v41  ;;  %v2082_v10 = vadd.f32 %v2081_v51, %v1992_v34  ;;  %v1392_v16 = vpop.f32.mrf.mxu1  ;;  %v2172_v40 = vpop.f32.mrf.mxu0 }
 0x21b   : > { %v1393_v50 = vadd.f32 %v1392_v16, %v4026_v13 }
 0x21c   : > { %v2412_v27 = vadd.f32 %v2411_v2, %v2381_v30  ;;  %v2171_v61 = vadd.f32 %v2170_v23, %v2082_v10  ;;  %v3152_v23 = vor.u32 %v3436_v33, %v3149_v1  ;;  %v3161_v33 = vld [vmem:[%s3560_s25 + $0x15c] sm:$0xf0] }
 0x21e   : > { %v2244_v26 = vadd.f32 %v2171_v61, %v1391_v29  ;;  %v3159_v61 = vld [vmem:[%s3560_s25 + $0x150] sm:$0xf] }
 0x220   : > { %v2280_v20 = vadd.f32 %v4214_v9, %v2244_v26  ;;  %v3440_v26 = vld [vmem:[%s3560_s25 + $0x158] sm:$0xf0] }
 0x221   : > { %v1994_v31 = vpop.f32.mrf.mxu2  ;;  %v2083_v19 = vpop.f32.mrf.mxu3 }
 0x222   : > { %2312 = vst [vmem:[%s3555_s22 + $0x20] sm:$0xff] %v2280_v20  ;;  %v2344_v48 = vadd.f32 %v2343_v11, %v2280_v20  ;;  %v2382_v12 = vmul.f32 %v2280_v20, %v2280_v20  ;;  %v2084_v2 = vadd.f32 %v2083_v19, %v1994_v31  ;;  %v1395_v56 = vpop.f32.mrf.mxu1  ;;  %v2175_v4 = vpop.f32.mrf.mxu0  ;;  %v3160_v19 = vor.u32 %v3440_v26, %v3159_v61  ;;  %v3444_v61 = vld [vmem:[%s3560_s25 + $0x178] sm:$0xf0]  ;;  %v3173_v26 = vld [vmem:[%s3560_s25 + $0x174] sm:$0xf0] }
 0x224   : > { %v2413_v42 = vadd.f32 %v2412_v27, %v2382_v12  ;;  %v2173_v46 = vadd.f32 %v2172_v40, %v2084_v2  ;;  %v1396_v27 = vadd.f32 %v1395_v56, %v4031_v5  ;;  %v3164_v56 = vor.u32 %v3439_v37, %v3161_v33 }
 0x225   : > { %1434 = vmatmul.bf16.gmra.mxu1 %v3995_v63  ;;  %2214 = vmatmul.bf16.gmra.mxu0 %v3156_v55 }
 0x226   : > { %v2245_v41 = vadd.f32 %v2173_v46, %v1393_v50  ;;  %2036 = vmatmul.bf16.gmra.mxu2 %v3148_v17  ;;  %2125 = vmatmul.bf16.gmra.mxu3 %v3152_v23  ;;  %v3168_v17 = vor.u32 %v3441_v60, %v3167_v45 }
 0x228   : > { %v2281_v34 = vadd.f32 %v4214_v9, %v2245_v41 }
 0x229   : > { %v1997_v51 = vpop.f32.mrf.mxu2  ;;  %v2086_v11 = vpop.f32.mrf.mxu3 }
 0x22a   : > { %2313 = vst [vmem:[%s3555_s22 + $0x28] sm:$0xff] %v2281_v34  ;;  %v2345_v30 = vadd.f32 %v2344_v48, %v2281_v34  ;;  %v2383_v13 = vmul.f32 %v2281_v34, %v2281_v34  ;;  %v2087_v10 = vadd.f32 %v2086_v11, %v1997_v51  ;;  %v1397_v16 = vpop.f32.mrf.mxu1  ;;  %v2177_v63 = vpop.f32.mrf.mxu0 }
 0x22b   : > { %v1398_v23 = vadd.f32 %v1397_v16, %v4045_v36 }
 0x22c   : > { %v2414_v40 = vadd.f32 %v2413_v42, %v2383_v13  ;;  %v2176_v29 = vadd.f32 %v2175_v4, %v2087_v10 }
 0x22e   : > { %v2246_v53 = vadd.f32 %v2176_v29, %v1396_v27  ;;  %v3443_v27 = vld [vmem:[%s3560_s25 + $0x170] sm:$0xf0]  ;;  %v3179_v29 = vld [vmem:[%s3560_s25 + $0x170] sm:$0xf] }
 0x230   : > { %v2282_v1 = vadd.f32 %v4214_v9, %v2246_v53  ;;  %v3442_v53 = vld [vmem:[%s3560_s25 + $0x16c] sm:$0xf] }
 0x231   : > { %v1999_v20 = vpop.f32.mrf.mxu2  ;;  %v2088_v31 = vpop.f32.mrf.mxu3 }
 0x232   : > { %2314 = vst [vmem:[%s3555_s22 + $0x30] sm:$0xff] %v2282_v1  ;;  %v2346_v55 = vadd.f32 %v2345_v30, %v2282_v1  ;;  %v2384_v48 = vmul.f32 %v2282_v1, %v2282_v1  ;;  %v2089_v12 = vadd.f32 %v2088_v31, %v1999_v20  ;;  %v1400_v5 = vpop.f32.mrf.mxu1  ;;  %v2180_v2 = vpop.f32.mrf.mxu0  ;;  %v3180_v1 = vor.u32 %v3444_v61, %v3179_v29 }
 0x233   : > { %v1401_v10 = vadd.f32 %v1400_v5, %v4056_v6 }
 0x234   : > { %v2415_v4 = vadd.f32 %v2414_v40, %v2384_v48  ;;  %v2178_v42 = vadd.f32 %v2177_v63, %v2089_v12  ;;  %v3171_v63 = vld [vmem:[%s3560_s25 + $0x168] sm:$0xf] }
 0x235   : > { %1439 = vmatmul.bf16.gmra.mxu1 %v4021_v7  ;;  %2219 = vmatmul.bf16.gmra.mxu0 %v3168_v17  ;;  %v3172_v33 = vor.u32 %v3443_v27, %v3171_v63 }
 0x236   : > { %v2247_v50 = vadd.f32 %v2178_v42, %v1398_v23  ;;  %2041 = vmatmul.bf16.gmra.mxu2 %v3160_v19  ;;  %2130 = vmatmul.bf16.gmra.mxu3 %v3164_v56 }
 0x238   : > { %v2283_v46 = vadd.f32 %v4214_v9, %v2247_v50 }
 0x239   : > { %v2002_v41 = vpop.f32.mrf.mxu2  ;;  %v2091_v34 = vpop.f32.mrf.mxu3 }
 0x23a   : > { %2315 = vst [vmem:[%s3555_s22 + $0x38] sm:$0xff] %v2283_v46  ;;  %v2347_v51 = vadd.f32 %v2346_v55, %v2283_v46  ;;  %v2385_v36 = vmul.f32 %v2283_v46, %v2283_v46  ;;  %v2092_v11 = vadd.f32 %v2091_v34, %v2002_v41  ;;  %v1402_v30 = vpop.f32.mrf.mxu1  ;;  %v2182_v7 = vpop.f32.mrf.mxu0  ;;  %v3176_v55 = vor.u32 %v3442_v53, %v3173_v26 }
 0x23b   : > { %v1403_v12 = vadd.f32 %v1402_v30, %v4065_v32  ;;  %v3446_v30 = vld [vmem:[%s3560_s25 + $0x188] sm:$0xf0] }
 0x23c   : > { %v2416_v13 = vadd.f32 %v2415_v4, %v2385_v36  ;;  %v2181_v16 = vadd.f32 %v2180_v2, %v2092_v11  ;;  %v3183_v36 = vld [vmem:[%s3560_s25 + $0x180] sm:$0xf] }
 0x23d   : > { %v3184_v29 = vor.u32 %v3446_v30, %v3183_v36 }
 0x23e   : > { %v2248_v40 = vadd.f32 %v2181_v16, %v1401_v10  ;;  %v3445_v10 = vld [vmem:[%s3560_s25 + $0x184] sm:$0xf]  ;;  %v3185_v16 = vld [vmem:[%s3560_s25 + $0x18c] sm:$0xf0] }
 0x240   : > { %v2284_v45 = vadd.f32 %v4214_v9, %v2248_v40 }
 0x241   : > { %v2004_v60 = vpop.f32.mrf.mxu2  ;;  %v2093_v37 = vpop.f32.mrf.mxu3 }
 0x242   : > { %2316 = vst [vmem:[%s3555_s22 + $0x40] sm:$0xff] %v2284_v45  ;;  %v2348_v20 = vadd.f32 %v2347_v51, %v2284_v45  ;;  %v2386_v31 = vmul.f32 %v2284_v45, %v2284_v45  ;;  %v2094_v19 = vadd.f32 %v2093_v37, %v2004_v60  ;;  %v1405_v6 = vpop.f32.mrf.mxu1  ;;  %v2185_v17 = vpop.f32.mrf.mxu0  ;;  %v3188_v37 = vor.u32 %v3445_v10, %v3185_v16 }
 0x243   : > { %v1406_v34 = vadd.f32 %v1405_v6, %v4070_v21 }
 0x244   : > { %v2417_v48 = vadd.f32 %v2416_v13, %v2386_v31  ;;  %v2183_v5 = vadd.f32 %v2182_v7, %v2094_v19  ;;  %v3191_v7 = vld [vmem:[%s3560_s25 + $0x188] sm:$0xf]  ;;  %v3447_v13 = vld [vmem:[%s3560_s25 + $0x190] sm:$0xf0] }
 0x245   : > { %1444 = vmatmul.bf16.gmra.mxu1 %v4035_v28  ;;  %2224 = vmatmul.bf16.gmra.mxu0 %v3180_v1  ;;  %v3192_v61 = vor.u32 %v3447_v13, %v3191_v7 }
 0x246   : > { %v2249_v2 = vadd.f32 %v2183_v5, %v1403_v12  ;;  %2046 = vmatmul.bf16.gmra.mxu2 %v3172_v33  ;;  %2135 = vmatmul.bf16.gmra.mxu3 %v3176_v55 }
 0x248   : > { %v2285_v56 = vadd.f32 %v4214_v9, %v2249_v2 }
 0x249   : > { %v2007_v4 = vpop.f32.mrf.mxu2  ;;  %v2096_v23 = vpop.f32.mrf.mxu3 }
 0x24a   : > { %2317 = vst [vmem:[%s3555_s22 + $0x48] sm:$0xff] %v2285_v56  ;;  %v2349_v42 = vadd.f32 %v2348_v20, %v2285_v56  ;;  %v2387_v32 = vmul.f32 %v2285_v56, %v2285_v56  ;;  %v2097_v50 = vadd.f32 %v2096_v23, %v2007_v4  ;;  %v1407_v46 = vpop.f32.mrf.mxu1  ;;  %v2187_v28 = vpop.f32.mrf.mxu0  ;;  %v3195_v4 = vld [vmem:[%s3560_s25 + $0x198] sm:$0xf] }
 0x24b   : > { %v1408_v1 = vadd.f32 %v1407_v46, %v4079_v52  ;;  %v3448_v46 = vld [vmem:[%s3560_s25 + $0x19c] sm:$0xf] }
 0x24c   : > { %v2418_v41 = vadd.f32 %v2417_v48, %v2387_v32  ;;  %v2186_v51 = vadd.f32 %v2185_v17, %v2097_v50  ;;  %v3203_v32 = vld [vmem:[%s3560_s25 + $0x1a0] sm:$0xf]  ;;  %v3450_v50 = vld [vmem:[%s3560_s25 + $0x1a8] sm:$0xf0] }
 0x24e   : > { %v2250_v11 = vadd.f32 %v2186_v51, %v1406_v34 }
 0x250   : > { %v2286_v63 = vadd.f32 %v4214_v9, %v2250_v11  ;;  %v3204_v11 = vor.u32 %v3450_v50, %v3203_v32 }
 0x251   : > { %v2009_v40 = vpop.f32.mrf.mxu2  ;;  %v2098_v27 = vpop.f32.mrf.mxu3 }
 0x252   : > { %2318 = vst [vmem:[%s3555_s22 + $0x50] sm:$0xff] %v2286_v63  ;;  %v2350_v53 = vadd.f32 %v2349_v42, %v2286_v63  ;;  %v2388_v26 = vmul.f32 %v2286_v63, %v2286_v63  ;;  %v2099_v45 = vadd.f32 %v2098_v27, %v2009_v40  ;;  %v1410_v21 = vpop.f32.mrf.mxu1  ;;  %v2190_v60 = vpop.f32.mrf.mxu0  ;;  %v3449_v42 = vld [vmem:[%s3560_s25 + $0x1a0] sm:$0xf0] }
 0x253   : > { %v1411_v2 = vadd.f32 %v1410_v21, %v4084_v25  ;;  %v3196_v36 = vor.u32 %v3449_v42, %v3195_v4 }
 0x254   : > { %v2419_v33 = vadd.f32 %v2418_v41, %v2388_v26  ;;  %v2188_v20 = vadd.f32 %v2187_v28, %v2099_v45  ;;  %v3197_v28 = vld [vmem:[%s3560_s25 + $0x1a4] sm:$0xf0] }
 0x255   : > { %1449 = vmatmul.bf16.gmra.mxu1 %v4061_v47  ;;  %2229 = vmatmul.bf16.gmra.mxu0 %v3192_v61  ;;  %v3200_v16 = vor.u32 %v3448_v46, %v3197_v28 }
 0x256   : > { %v2251_v31 = vadd.f32 %v2188_v20, %v1408_v1  ;;  %2051 = vmatmul.bf16.gmra.mxu2 %v3184_v29  ;;  %2140 = vmatmul.bf16.gmra.mxu3 %v3188_v37  ;;  %v4389_v29 = vld [vmem:[#allocation7_spill] sm:$0xff] }
 0x258   : > { %v2287_v19 = vadd.f32 %v4214_v9, %v2251_v31 }
 0x259   : > { %v2012_v6 = vpop.f32.mrf.mxu2  ;;  %v2101_v17 = vpop.f32.mrf.mxu3 }
 0x25a   : > { %2319 = vst [vmem:[%s3555_s22 + $0x58] sm:$0xff] %v2287_v19  ;;  %v2351_v55 = vadd.f32 %v2350_v53, %v2287_v19  ;;  %v2389_v52 = vmul.f32 %v2287_v19, %v2287_v19  ;;  %v2102_v48 = vadd.f32 %v2101_v17, %v2012_v6  ;;  %v1412_v12 = vpop.f32.mrf.mxu1  ;;  %v2192_v47 = vpop.f32.mrf.mxu0 }
 0x25b   : > { %v1413_v40 = vadd.f32 %v1412_v12, %v4090_v3 }
 0x25c   : > { %v2420_v5 = vadd.f32 %v2419_v33, %v2389_v52  ;;  %v2191_v56 = vadd.f32 %v2190_v60, %v2102_v48 }
 0x25e   : > { %v2252_v23 = vadd.f32 %v2191_v56, %v1411_v2 }
 0x260   : > { %v2288_v41 = vadd.f32 %v4214_v9, %v2252_v23 }
 0x261   : > { %v2014_v34 = vpop.f32.mrf.mxu2  ;;  %v2103_v51 = vpop.f32.mrf.mxu3 }
 0x262   : > { %2320 = vst [vmem:[%s3555_s22 + $0x60] sm:$0xff] %v2288_v41  ;;  %v2352_v30 = vadd.f32 %v2351_v55, %v2288_v41  ;;  %v2390_v7 = vmul.f32 %v2288_v41, %v2288_v41  ;;  %v2104_v13 = vadd.f32 %v2103_v51, %v2014_v34  ;;  %v1415_v25 = vpop.f32.mrf.mxu1  ;;  %v2195_v10 = vpop.f32.mrf.mxu0 }
 0x263   : > { %v1416_v3 = vadd.f32 %v1415_v25, %v4098_v22 }
 0x264   : > { %v2421_v63 = vadd.f32 %v2420_v5, %v2390_v7  ;;  %v2193_v27 = vadd.f32 %v2192_v47, %v2104_v13 }
 0x265   : > { %1454 = vmatmul.bf16.gmra.mxu1 %v4389_v29  ;;  %2234 = vmatmul.bf16.gmra.mxu0 %v3204_v11 }
 0x266   : > { %v2253_v61 = vadd.f32 %v2193_v27, %v1413_v40  ;;  %2056 = vmatmul.bf16.gmra.mxu2 %v3196_v36  ;;  %2145 = vmatmul.bf16.gmra.mxu3 %v3200_v16 }
 0x268   : > { %v2289_v53 = vadd.f32 %v4214_v9, %v2253_v61 }
 0x269   : > { %v2017_v26 = vpop.f32.mrf.mxu2  ;;  %v2106_v45 = vpop.f32.mrf.mxu3 }
 0x26a   : > { %2321 = vst [vmem:[%s3555_s22 + $0x68] sm:$0xff] %v2289_v53  ;;  %v2353_v21 = vadd.f32 %v2352_v30, %v2289_v53  ;;  %v2391_v60 = vmul.f32 %v2289_v53, %v2289_v53  ;;  %v2107_v37 = vadd.f32 %v2106_v45, %v2017_v26  ;;  %v1417_v33 = vpop.f32.mrf.mxu1  ;;  %v2197_v1 = vpop.f32.mrf.mxu0 }
 0x26b   : > { %v1418_v56 = vadd.f32 %v1417_v33, %v4104_v35 }
 0x26c   : > { %v2422_v20 = vadd.f32 %v2421_v63, %v2391_v60  ;;  %v2196_v31 = vadd.f32 %v2195_v10, %v2107_v37 }
 0x26e   : > { %v2254_v19 = vadd.f32 %v2196_v31, %v1416_v3 }
 0x270   : > { %v2290_v6 = vadd.f32 %v4214_v9, %v2254_v19 }
 0x271   : > { %v2019_v17 = vpop.f32.mrf.mxu2  ;;  %v2108_v55 = vpop.f32.mrf.mxu3 }
 0x272   : > { %2322 = vst [vmem:[%s3555_s22 + $0x70] sm:$0xff] %v2290_v6  ;;  %v2354_v52 = vadd.f32 %v2353_v21, %v2290_v6  ;;  %v2392_v48 = vmul.f32 %v2290_v6, %v2290_v6  ;;  %v2109_v12 = vadd.f32 %v2108_v55, %v2019_v17  ;;  %v1420_v47 = vpop.f32.mrf.mxu1  ;;  %v2200_v5 = vpop.f32.mrf.mxu0 }
 0x273   : > { %v1421_v36 = vadd.f32 %v1420_v47, %v4110_v18 }
 0x274   : > { %v2423_v2 = vadd.f32 %v2422_v20, %v2392_v48  ;;  %v2198_v4 = vadd.f32 %v2197_v1, %v2109_v12 }
 0x276   : > { %v2255_v23 = vadd.f32 %v2198_v4, %v1418_v56 }
 0x278   : > { %v2291_v22 = vadd.f32 %v4214_v9, %v2255_v23 }
 0x279   : > { %v2022_v42 = vpop.f32.mrf.mxu2  ;;  %v2111_v32 = vpop.f32.mrf.mxu3 }
 0x27a   : > { %2323 = vst [vmem:[%s3555_s22 + $0x78] sm:$0xff] %v2291_v22  ;;  %v2355_v50 = vadd.f32 %v2354_v52, %v2291_v22  ;;  %v2393_v46 = vmul.f32 %v2291_v22, %v2291_v22  ;;  %v2112_v28 = vadd.f32 %v2111_v32, %v2022_v42  ;;  %v1422_v41 = vpop.f32.mrf.mxu1  ;;  %v2202_v34 = vpop.f32.mrf.mxu0 }
 0x27b   : > { %v1423_v29 = vadd.f32 %v1422_v41, %v4117_v38 }
 0x27c   : > { %v2424_v51 = vadd.f32 %v2423_v2, %v2393_v46  ;;  %v2201_v11 = vadd.f32 %v2200_v5, %v2112_v28 }
 0x27e   : > { %v2256_v30 = vadd.f32 %v2201_v11, %v1421_v36 }
 0x280   : > { %v2292_v35 = vadd.f32 %v4214_v9, %v2256_v30 }
 0x281   : > { %v2024_v7 = vpop.f32.mrf.mxu2  ;;  %v2113_v13 = vpop.f32.mrf.mxu3 }
 0x282   : > { %2324 = vst [vmem:[%s3555_s22 + $0x80] sm:$0xff] %v2292_v35  ;;  %v2356_v25 = vadd.f32 %v2355_v50, %v2292_v35  ;;  %v2394_v10 = vmul.f32 %v2292_v35, %v2292_v35  ;;  %v2114_v16 = vadd.f32 %v2113_v13, %v2024_v7  ;;  %v1425_v63 = vpop.f32.mrf.mxu1  ;;  %v2205_v40 = vpop.f32.mrf.mxu0 }
 0x283   : > { %v1426_v3 = vadd.f32 %v1425_v63, %v4123_v43 }
 0x284   : > { %v2425_v27 = vadd.f32 %v2424_v51, %v2394_v10  ;;  %v2203_v61 = vadd.f32 %v2202_v34, %v2114_v16 }
 0x286   : > { %v2257_v53 = vadd.f32 %v2203_v61, %v1423_v29 }
 0x288   : > { %v2293_v18 = vadd.f32 %v4214_v9, %v2257_v53 }
 0x289   : > { %v2027_v26 = vpop.f32.mrf.mxu2  ;;  %v2116_v45 = vpop.f32.mrf.mxu3 }
 0x28a   : > { %2325 = vst [vmem:[%s3555_s22 + $0x88] sm:$0xff] %v2293_v18  ;;  %v2357_v21 = vadd.f32 %v2356_v25, %v2293_v18  ;;  %v2395_v60 = vmul.f32 %v2293_v18, %v2293_v18  ;;  %v2117_v37 = vadd.f32 %v2116_v45, %v2027_v26  ;;  %v1427_v33 = vpop.f32.mrf.mxu1  ;;  %v2207_v1 = vpop.f32.mrf.mxu0 }
 0x28b   : > { %v1428_v2 = vadd.f32 %v1427_v33, %v4130_v57 }
 0x28c   : > { %v2426_v20 = vadd.f32 %v2425_v27, %v2395_v60  ;;  %v2206_v31 = vadd.f32 %v2205_v40, %v2117_v37 }
 0x28e   : > { %v2258_v19 = vadd.f32 %v2206_v31, %v1426_v3 }
 0x290   : > { %v2294_v38 = vadd.f32 %v4214_v9, %v2258_v19 }
 0x291   : > { %v2029_v6 = vpop.f32.mrf.mxu2  ;;  %v2118_v17 = vpop.f32.mrf.mxu3 }
 0x292   : > { %2326 = vst [vmem:[%s3555_s22 + $0x90] sm:$0xff] %v2294_v38  ;;  %v2358_v55 = vadd.f32 %v2357_v21, %v2294_v38  ;;  %v2396_v52 = vmul.f32 %v2294_v38, %v2294_v38  ;;  %v2119_v48 = vadd.f32 %v2118_v17, %v2029_v6  ;;  %v1430_v12 = vpop.f32.mrf.mxu1  ;;  %v2210_v47 = vpop.f32.mrf.mxu0 }
 0x293   : > { %v1431_v34 = vadd.f32 %v1430_v12, %v4136_v58 }
 0x294   : > { %v2427_v5 = vadd.f32 %v2426_v20, %v2396_v52  ;;  %v2208_v56 = vadd.f32 %v2207_v1, %v2119_v48 }
 0x296   : > { %v2259_v4 = vadd.f32 %v2208_v56, %v1428_v2 }
 0x298   : > { %v2295_v43 = vadd.f32 %v4214_v9, %v2259_v4 }
 0x299   : > { %v2032_v23 = vpop.f32.mrf.mxu2  ;;  %v2121_v22 = vpop.f32.mrf.mxu3 }
 0x29a   : > { %2327 = vst [vmem:[%s3555_s22 + $0x98] sm:$0xff] %v2295_v43  ;;  %v2359_v42 = vadd.f32 %v2358_v55, %v2295_v43  ;;  %v2397_v32 = vmul.f32 %v2295_v43, %v2295_v43  ;;  %v2122_v50 = vadd.f32 %v2121_v22, %v2032_v23  ;;  %v1432_v46 = vpop.f32.mrf.mxu1  ;;  %v2212_v28 = vpop.f32.mrf.mxu0 }
 0x29b   : > { %v1433_v63 = vadd.f32 %v1432_v46, %v4143_v14 }
 0x29c   : > { %v2428_v41 = vadd.f32 %v2427_v5, %v2397_v32  ;;  %v2211_v51 = vadd.f32 %v2210_v47, %v2122_v50 }
 0x29e   : > { %v2260_v36 = vadd.f32 %v2211_v51, %v1431_v34 }
 0x2a0   : > { %v2296_v57 = vadd.f32 %v4214_v9, %v2260_v36 }
 0x2a1   : > { %v2034_v11 = vpop.f32.mrf.mxu2  ;;  %v2123_v30 = vpop.f32.mrf.mxu3 }
 0x2a2   : > { %2328 = vst [vmem:[%s3555_s22 + $0xa0] sm:$0xff] %v2296_v57  ;;  %v2360_v35 = vadd.f32 %v2359_v42, %v2296_v57  ;;  %v2398_v7 = vmul.f32 %v2296_v57, %v2296_v57  ;;  %v2124_v13 = vadd.f32 %v2123_v30, %v2034_v11  ;;  %v1435_v25 = vpop.f32.mrf.mxu1  ;;  %v2215_v10 = vpop.f32.mrf.mxu0 }
 0x2a3   : > { %v1436_v37 = vadd.f32 %v1435_v25, %v4149_v0 }
 0x2a4   : > { %v2429_v16 = vadd.f32 %v2428_v41, %v2398_v7  ;;  %v2213_v40 = vadd.f32 %v2212_v28, %v2124_v13 }
 0x2a6   : > { %v2261_v27 = vadd.f32 %v2213_v40, %v1433_v63 }
 0x2a8   : > { %v2297_v58 = vadd.f32 %v4214_v9, %v2261_v27 }
 0x2a9   : > { %v2037_v29 = vpop.f32.mrf.mxu2  ;;  %v2126_v61 = vpop.f32.mrf.mxu3 }
 0x2aa   : > { %2329 = vst [vmem:[%s3555_s22 + $0xa8] sm:$0xff] %v2297_v58  ;;  %v2361_v53 = vadd.f32 %v2360_v35, %v2297_v58  ;;  %v2399_v18 = vmul.f32 %v2297_v58, %v2297_v58  ;;  %v2127_v26 = vadd.f32 %v2126_v61, %v2037_v29  ;;  %v1437_v45 = vpop.f32.mrf.mxu1  ;;  %v2217_v21 = vpop.f32.mrf.mxu0 }
 0x2ab   : > { %v1438_v52 = vadd.f32 %v1437_v45, %v4156_v54 }
 0x2ac   : > { %v2430_v60 = vadd.f32 %v2429_v16, %v2399_v18  ;;  %v2216_v33 = vadd.f32 %v2215_v10, %v2127_v26 }
 0x2ae   : > { %v2262_v1 = vadd.f32 %v2216_v33, %v1436_v37 }
 0x2b0   : > { %v2298_v14 = vadd.f32 %v4214_v9, %v2262_v1 }
 0x2b1   : > { %v2039_v20 = vpop.f32.mrf.mxu2  ;;  %v2128_v3 = vpop.f32.mrf.mxu3 }
 0x2b2   : > { %2330 = vst [vmem:[%s3555_s22 + $0xb0] sm:$0xff] %v2298_v14  ;;  %v2362_v31 = vadd.f32 %v2361_v53, %v2298_v14  ;;  %v2400_v19 = vmul.f32 %v2298_v14, %v2298_v14  ;;  %v2129_v38 = vadd.f32 %v2128_v3, %v2039_v20  ;;  %v1440_v6 = vpop.f32.mrf.mxu1  ;;  %v2220_v17 = vpop.f32.mrf.mxu0 }
 0x2b3   : > { %v1441_v42 = vadd.f32 %v1440_v6, %v4162_v8 }
 0x2b4   : > { %v2431_v55 = vadd.f32 %v2430_v60, %v2400_v19  ;;  %v2218_v48 = vadd.f32 %v2217_v21, %v2129_v38 }
 0x2b6   : > { %v2263_v12 = vadd.f32 %v2218_v48, %v1438_v52 }
 0x2b8   : > { %v2299_v0 = vadd.f32 %v4214_v9, %v2263_v12 }
 0x2b9   : > { %v2042_v47 = vpop.f32.mrf.mxu2  ;;  %v2131_v5 = vpop.f32.mrf.mxu3 }
 0x2ba   : > { %2331 = vst [vmem:[%s3555_s22 + $0xb8] sm:$0xff] %v2299_v0  ;;  %v2363_v2 = vadd.f32 %v2362_v31, %v2299_v0  ;;  %v2401_v56 = vmul.f32 %v2299_v0, %v2299_v0  ;;  %v2132_v4 = vadd.f32 %v2131_v5, %v2042_v47  ;;  %v1442_v43 = vpop.f32.mrf.mxu1  ;;  %v2222_v23 = vpop.f32.mrf.mxu0 }
 0x2bb   : > { %v1443_v30 = vadd.f32 %v1442_v43, %v4169_v39 }
 0x2bc   : > { %v2432_v22 = vadd.f32 %v2431_v55, %v2401_v56  ;;  %v2221_v32 = vadd.f32 %v2220_v17, %v2132_v4 }
 0x2be   : > { %v2264_v50 = vadd.f32 %v2221_v32, %v1441_v42 }
 0x2c0   : > { %v2300_v54 = vadd.f32 %v4214_v9, %v2264_v50 }
 0x2c1   : > { %v2044_v46 = vpop.f32.mrf.mxu2  ;;  %v2133_v28 = vpop.f32.mrf.mxu3 }
 0x2c2   : > { %2332 = vst [vmem:[%s3555_s22 + $0xc0] sm:$0xff] %v2300_v54  ;;  %v2364_v41 = vadd.f32 %v2363_v2, %v2300_v54  ;;  %v2402_v34 = vmul.f32 %v2300_v54, %v2300_v54  ;;  %v2134_v51 = vadd.f32 %v2133_v28, %v2044_v46  ;;  %v1445_v36 = vpop.f32.mrf.mxu1  ;;  %v2225_v57 = vpop.f32.mrf.mxu0 }
 0x2c3   : > { %v1446_v29 = vadd.f32 %v1445_v36, %v4175_v24 }
 0x2c4   : > { %v2433_v11 = vadd.f32 %v2432_v22, %v2402_v34  ;;  %v2223_v35 = vadd.f32 %v2222_v23, %v2134_v51 }
 0x2c6   : > { %v2265_v7 = vadd.f32 %v2223_v35, %v1443_v30 }
 0x2c8   : > { %v2301_v8 = vadd.f32 %v4214_v9, %v2265_v7 }
 0x2c9   : > { %v2047_v13 = vpop.f32.mrf.mxu2  ;;  %v2136_v25 = vpop.f32.mrf.mxu3 }
 0x2ca   : > { %2333 = vst [vmem:[%s3555_s22 + $0xc8] sm:$0xff] %v2301_v8  ;;  %v2365_v10 = vadd.f32 %v2364_v41, %v2301_v8  ;;  %v2403_v16 = vmul.f32 %v2301_v8, %v2301_v8  ;;  %v2137_v63 = vadd.f32 %v2136_v25, %v2047_v13  ;;  %v1447_v40 = vpop.f32.mrf.mxu1  ;;  %v2227_v27 = vpop.f32.mrf.mxu0 }
 0x2cb   : > { %v1448_v1 = vadd.f32 %v1447_v40, %v4182_v59 }
 0x2cc   : > { %v2434_v58 = vadd.f32 %v2433_v11, %v2403_v16  ;;  %v2226_v61 = vadd.f32 %v2225_v57, %v2137_v63 }
 0x2ce   : > { %v2266_v53 = vadd.f32 %v2226_v61, %v1446_v29 }
 0x2d0   : > { %v2302_v39 = vadd.f32 %v4214_v9, %v2266_v53 }
 0x2d1   : > { %v2049_v18 = vpop.f32.mrf.mxu2  ;;  %v2138_v26 = vpop.f32.mrf.mxu3 }
 0x2d2   : > { %2334 = vst [vmem:[%s3555_s22 + $0xd0] sm:$0xff] %v2302_v39  ;;  %v2366_v45 = vadd.f32 %v2365_v10, %v2302_v39  ;;  %v2404_v21 = vmul.f32 %v2302_v39, %v2302_v39  ;;  %v2139_v60 = vadd.f32 %v2138_v26, %v2049_v18  ;;  %v1450_v37 = vpop.f32.mrf.mxu1  ;;  %v2230_v20 = vpop.f32.mrf.mxu0 }
 0x2d3   : > { %v1451_v52 = vadd.f32 %v1450_v37, %v4188_v44 }
 0x2d4   : > { %v2435_v33 = vadd.f32 %v2434_v58, %v2404_v21  ;;  %v2228_v14 = vadd.f32 %v2227_v27, %v2139_v60 }
 0x2d6   : > { %v2267_v3 = vadd.f32 %v2228_v14, %v1448_v1 }
 0x2d8   : > { %v2303_v24 = vadd.f32 %v4214_v9, %v2267_v3 }
 0x2d9   : > { %v2052_v31 = vpop.f32.mrf.mxu2  ;;  %v2141_v19 = vpop.f32.mrf.mxu3 }
 0x2da   : > { %2335 = vst [vmem:[%s3555_s22 + $0xd8] sm:$0xff] %v2303_v24  ;;  %v2367_v38 = vadd.f32 %v2366_v45, %v2303_v24  ;;  %v2405_v6 = vmul.f32 %v2303_v24, %v2303_v24  ;;  %v2142_v17 = vadd.f32 %v2141_v19, %v2052_v31  ;;  %v1452_v12 = vpop.f32.mrf.mxu1  ;;  %v2232_v47 = vpop.f32.mrf.mxu0 }
 0x2db   : > { %v1453_v22 = vadd.f32 %v1452_v12, %v4195_v15 }
 0x2dc   : > { %v2436_v55 = vadd.f32 %v2435_v33, %v2405_v6  ;;  %v2231_v48 = vadd.f32 %v2230_v20, %v2142_v17 }
 0x2de   : > { %v2268_v0 = vadd.f32 %v2231_v48, %v1451_v52 }
 0x2e0   : > { %v2304_v59 = vadd.f32 %v4214_v9, %v2268_v0 }
 0x2e1   : > { %v2054_v5 = vpop.f32.mrf.mxu2  ;;  %v2143_v2 = vpop.f32.mrf.mxu3 }
 0x2e2   : > { %2336 = vst [vmem:[%s3555_s22 + $0xe0] sm:$0xff] %v2304_v59  ;;  %v2368_v56 = vadd.f32 %v2367_v38, %v2304_v59  ;;  %v2406_v4 = vmul.f32 %v2304_v59, %v2304_v59  ;;  %v2144_v43 = vadd.f32 %v2143_v2, %v2054_v5  ;;  %v1455_v50 = vpop.f32.mrf.mxu1  ;;  %v2235_v54 = vpop.f32.mrf.mxu0 }
 0x2e3   : > { %v1456_v57 = vadd.f32 %v1455_v50, %v4201_v62 }
 0x2e4   : > { %v2437_v23 = vadd.f32 %v2436_v55, %v2406_v4  ;;  %v2233_v42 = vadd.f32 %v2232_v47, %v2144_v43 }
 0x2e6   : > { %v2269_v32 = vadd.f32 %v2233_v42, %v1453_v22 }
 0x2e8   : > { %v2305_v44 = vadd.f32 %v4214_v9, %v2269_v32 }
 0x2e9   : > { %v2057_v46 = vpop.f32.mrf.mxu2  ;;  %v2146_v28 = vpop.f32.mrf.mxu3 }
 0x2ea   : > { %2337 = vst [vmem:[%s3555_s22 + $0xe8] sm:$0xff] %v2305_v44  ;;  %v2369_v41 = vadd.f32 %v2368_v56, %v2305_v44  ;;  %v2407_v34 = vmul.f32 %v2305_v44, %v2305_v44  ;;  %v2147_v51 = vadd.f32 %v2146_v28, %v2057_v46  ;;  %v1457_v35 = vpop.f32.mrf.mxu1  ;;  %v2237_v16 = vpop.f32.mrf.mxu0 }
 0x2eb   : > { %v1458_v40 = vadd.f32 %v1457_v35, %v4208_v49  ;;  %v2340_v49 = vld [vmem:[%s4373_s4] sm:$0x3] }
 0x2ec   : > { %v2438_v36 = vadd.f32 %v2437_v23, %v2407_v34  ;;  %v2236_v11 = vadd.f32 %v2235_v54, %v2147_v51 }
 0x2ee   : > { %v2270_v30 = vadd.f32 %v2236_v11, %v1456_v57 }
 0x2f0   : > { %v2306_v15 = vadd.f32 %v4214_v9, %v2270_v30 }
 0x2f1   : > { %v2059_v7 = vpop.f32.mrf.mxu2  ;;  %v2148_v8 = vpop.f32.mrf.mxu3 }
 0x2f2   : > { %2338 = vst [vmem:[%s3555_s22 + $0xf0] sm:$0xff] %v2306_v15  ;;  %v2370_v13 = vadd.f32 %v2369_v41, %v2306_v15  ;;  %v2408_v25 = vmul.f32 %v2306_v15, %v2306_v15  ;;  %v2149_v10 = vadd.f32 %v2148_v8, %v2059_v7 }
 0x2f4   : > { %v2439_v63 = vadd.f32 %v2438_v36, %v2408_v25  ;;  %v2238_v27 = vadd.f32 %v2237_v16, %v2149_v10 }
 0x2f6   : > { %v2271_v58 = vadd.f32 %v2238_v27, %v1458_v40 }
 0x2f8   : > { %v2307_v62 = vadd.f32 %v4214_v9, %v2271_v58 }
 0x2fa   : > { %2339 = vst [vmem:[%s3555_s22 + $0xf8] sm:$0xff] %v2307_v62  ;;  %v2371_v29 = vadd.f32 %v2370_v13, %v2307_v62  ;;  %v2409_v61 = vmul.f32 %v2307_v62, %v2307_v62 }
 0x2fc   : > { %v2372_v53 = vrot.slane %v2371_v29, 4  ;;  %v2440_v39 = vadd.f32 %v2439_v63, %v2409_v61 }
 0x2fe   : > { %v2373_v18 = vadd.f32 %v2372_v53, %v2371_v29  ;;  %v2441_v26 = vrot.slane %v2440_v39, 4 }
 0x300   : > { %v2374_v45 = vrot.slane %v2373_v18, 2  ;;  %v2442_v21 = vadd.f32 %v2441_v26, %v2440_v39 }
 0x302   : > { %v2375_v60 = vadd.f32 %v2374_v45, %v2373_v18  ;;  %v2443_v37 = vrot.slane %v2442_v21, 2 }
 0x304   : > { %v2376_v33 = vrot.slane %v2375_v60, 1  ;;  %v2444_v1 = vadd.f32 %v2443_v37, %v2442_v21 }
 0x306   : > { %v2445_v14 = vrot.slane %v2444_v1, 1  ;;  %v2377_v9 = vadd.f32 %v2376_v33, %v2375_v60 }
 0x308   : > { %v2446_v20 = vadd.f32 %v2445_v14, %v2444_v1 }
 0x30a   : > { %v2448_v3 = vsel %vm2447_vm0, %v2377_v9, %v2446_v20 }
 0x30b   : > { %v2449_v24 = vadd.f32 %v2448_v3, %v2340_v49 }
 0x30d   : > { %2450 = vst [vmem:[%s4373_s4] sm:$0x3] %v2449_v24 }
 0x30e PF: > { %s15_s15 = sadd.s32 1, %s3516_s15  }
 0x30f   : > { %p12_p5 = scmp.ge.s32.totalorder %s15_s15, 4  }
 0x311   :  { %14 = sbr.rel (!%p12_p5) target bundleno = 1 (0x1), region = 76 }

// kernel: up_forward.5
= control target key start
LH: loop header
LB: loop body
LE: loop exit
PB: predicated region body
PF: predicated region fallthrough
CT: control target
= control target key end

     0   :  { %s445_s12 = smov 0   ;;  %s604_s0 = inlined_call_operand.vmem [shape: f32[2,256,128], index: 0, kind: input, shape index: {}]   ;;  %s605_s1 = inlined_call_operand.vmem [shape: f32[1,128], index: 1, kind: input, shape index: {}]   ;;  %s606_s2 = inlined_call_operand.vmem [shape: f32[1,128], index: 2, kind: input, shape index: {}]   ;;  %s607_s3 = inlined_call_operand.vmem [shape: f32[2,256,128], index: 3, kind: output, shape index: {}]  }
   0x1 LB: > { %s394_s13 = sadd.s32 4294967295, %s423_s12   ;;  %p398_p0 = scmp.ge.s32.totalorder %s423_s12, 1  ;;  %s423_s12 = sphi %s445_s12, %s13_s12  }
   0x2   : > { %p137_p1 = scmp.lt.s32.totalorder %s423_s12, 3 }
   0x4   : > { %p138_p2 = pnand %p398_p0, %p137_p1 }
   0x5   : > { %p161_p3 = scmp.lt.s32.totalorder (!%p138_p2), %s394_s13, 1 }
   0x6   : > { %141 = sbr.rel (%p138_p2) target bundleno = 53 (0x35), region = 32 }
   0xb   : > { %s609_s13 = smov (!%p161_p3, %s394_s13), 1  ;;  %v456_v0 = vld [vmem:[%s605_s1] ss:$0 sm:$0xff] }
   0xc   : > { %s405_s16 = sshll.u32 %s609_s13, 8  ;;  %v466_v1 = vld [vmem:[%s606_s2] ss:$0 sm:$0xff] }
   0xd   : > { %s461_s19 = scalar_lea.vmem %s604_s0, %s405_s16  ;;  %s489_s24 = scalar_lea.vmem %s607_s3, %s405_s16 }
   0xe   : > { %v171_v2 = vld [vmem:[%s461_s19] sm:$0xff]  ;;  %v172_v3 = vld [vmem:[%s461_s19 + $0x8] sm:$0xff]  ;;  %v173_v4 = vld [vmem:[%s461_s19 + $0x10] sm:$0xff] }
   0xf   : > { %v207_v5 = vmul.f32 %v456_v0, %v171_v2  ;;  %v208_v6 = vmul.f32 %v456_v0, %v172_v3  ;;  %v209_v7 = vmul.f32 %v456_v0, %v173_v4  ;;  %v174_v8 = vld [vmem:[%s461_s19 + $0x18] sm:$0xff]  ;;  %v175_v9 = vld [vmem:[%s461_s19 + $0x20] sm:$0xff]  ;;  %v176_v10 = vld [vmem:[%s461_s19 + $0x28] sm:$0xff] }
  0x10   : > { %v210_v11 = vmul.f32 %v456_v0, %v174_v8  ;;  %v211_v12 = vmul.f32 %v456_v0, %v175_v9  ;;  %v212_v13 = vmul.f32 %v456_v0, %v176_v10  ;;  %v177_v14 = vld [vmem:[%s461_s19 + $0x30] sm:$0xff]  ;;  %v178_v15 = vld [vmem:[%s461_s19 + $0x38] sm:$0xff]  ;;  %v179_v24 = vld [vmem:[%s461_s19 + $0x40] sm:$0xff] }
  0x11   : > { %v243_v16 = vadd.f32 %v466_v1, %v207_v5  ;;  %v244_v17 = vadd.f32 %v466_v1, %v208_v6  ;;  %v245_v18 = vadd.f32 %v466_v1, %v209_v7  ;;  %v213_v19 = vmul.f32 %v456_v0, %v177_v14  ;;  %v180_v25 = vld [vmem:[%s461_s19 + $0x48] sm:$0xff]  ;;  %v181_v26 = vld [vmem:[%s461_s19 + $0x50] sm:$0xff]  ;;  %v182_v31 = vld [vmem:[%s461_s19 + $0x58] sm:$0xff] }
  0x12   : > { %v246_v20 = vadd.f32 %v466_v1, %v210_v11  ;;  %v247_v21 = vadd.f32 %v466_v1, %v211_v12  ;;  %v248_v22 = vadd.f32 %v466_v1, %v212_v13  ;;  %v214_v23 = vmul.f32 %v456_v0, %v178_v15  ;;  %v183_v32 = vld [vmem:[%s461_s19 + $0x60] sm:$0xff]  ;;  %v184_v33 = vld [vmem:[%s461_s19 + $0x68] sm:$0xff]  ;;  %v185_v37 = vld [vmem:[%s461_s19 + $0x70] sm:$0xff] }
  0x13   : > { %v275_v27 = vmax.f32 %v243_v16, 0.0  ;;  %v276_v28 = vmax.f32 %v244_v17, 0.0  ;;  %v277_v29 = vmax.f32 %v245_v18, 0.0  ;;  %v249_v30 = vadd.f32 %v466_v1, %v213_v19  ;;  %v186_v42 = vld [vmem:[%s461_s19 + $0x78] sm:$0xff]  ;;  %v187_v54 = vld [vmem:[%s461_s19 + $0x80] sm:$0xff]  ;;  %v188_v55 = vld [vmem:[%s461_s19 + $0x88] sm:$0xff] }
  0x14   : > { %v278_v34 = vmax.f32 %v246_v20, 0.0  ;;  %v279_v35 = vmax.f32 %v247_v21, 0.0  ;;  %v250_v36 = vadd.f32 %v466_v1, %v214_v23  ;;  %v280_v38 = vmax.f32 %v248_v22, 0.0  ;;  %v189_v56 = vld [vmem:[%s461_s19 + $0x90] sm:$0xff]  ;;  %v190_v59 = vld [vmem:[%s461_s19 + $0x98] sm:$0xff]  ;;  %v191_v63 = vld [vmem:[%s461_s19 + $0xa0] sm:$0xff] }
  0x15   : > { %307 = vst [vmem:[%s489_s24] sm:$0xff] %v275_v27  ;;  %v215_v39 = vmul.f32 %v456_v0, %v179_v24  ;;  %v216_v40 = vmul.f32 %v456_v0, %v180_v25  ;;  %v217_v41 = vmul.f32 %v456_v0, %v181_v26  ;;  %v281_v43 = vmax.f32 %v249_v30, 0.0  ;;  %v192_v6 = vld [vmem:[%s461_s19 + $0xa8] sm:$0xff]  ;;  %v193_v10 = vld [vmem:[%s461_s19 + $0xb0] sm:$0xff]  ;;  %v194_v14 = vld [vmem:[%s461_s19 + $0xb8] sm:$0xff] }
  0x16   : > { %308 = vst [vmem:[%s489_s24 + $0x8] sm:$0xff] %v276_v28  ;;  %v218_v44 = vmul.f32 %v456_v0, %v182_v31  ;;  %v219_v45 = vmul.f32 %v456_v0, %v183_v32  ;;  %v220_v46 = vmul.f32 %v456_v0, %v184_v33  ;;  %v221_v50 = vmul.f32 %v456_v0, %v185_v37  ;;  %v195_v18 = vld [vmem:[%s461_s19 + $0xc0] sm:$0xff]  ;;  %v196_v22 = vld [vmem:[%s461_s19 + $0xc8] sm:$0xff]  ;;  %v197_v26 = vld [vmem:[%s461_s19 + $0xd0] sm:$0xff] }
  0x17   : > { %309 = vst [vmem:[%s489_s24 + $0x10] sm:$0xff] %v277_v29  ;;  %v251_v47 = vadd.f32 %v466_v1, %v215_v39  ;;  %v252_v48 = vadd.f32 %v466_v1, %v216_v40  ;;  %v253_v49 = vadd.f32 %v466_v1, %v217_v41  ;;  %v282_v51 = vmax.f32 %v250_v36, 0.0  ;;  %v198_v30 = vld [vmem:[%s461_s19 + $0xd8] sm:$0xff] }
  0x18   : > { %310 = vst [vmem:[%s489_s24 + $0x18] sm:$0xff] %v278_v34  ;;  %v254_v52 = vadd.f32 %v466_v1, %v218_v44  ;;  %v222_v53 = vmul.f32 %v456_v0, %v186_v42  ;;  %v255_v58 = vadd.f32 %v466_v1, %v219_v45  ;;  %v256_v62 = vadd.f32 %v466_v1, %v220_v46  ;;  %v199_v34 = vld [vmem:[%s461_s19 + $0xe0] sm:$0xff]  ;;  %v201_v42 = vld [vmem:[%s461_s19 + $0xf0] sm:$0xff]  ;;  %v202_v46 = vld [vmem:[%s461_s19 + $0xf8] sm:$0xff] }
  0x19   : > { %311 = vst [vmem:[%s489_s24 + $0x20] sm:$0xff] %v279_v35  ;;  %v283_v57 = vmax.f32 %v251_v47, 0.0  ;;  %v284_v60 = vmax.f32 %v252_v48, 0.0  ;;  %v285_v61 = vmax.f32 %v253_v49, 0.0  ;;  %v257_v2 = vadd.f32 %v466_v1, %v221_v50 }
  0x1a   : > { %312 = vst [vmem:[%s489_s24 + $0x28] sm:$0xff] %v280_v38  ;;  %v223_v3 = vmul.f32 %v456_v0, %v187_v54  ;;  %v224_v4 = vmul.f32 %v456_v0, %v188_v55  ;;  %v225_v5 = vmul.f32 %v456_v0, %v189_v56  ;;  %v286_v7 = vmax.f32 %v254_v52, 0.0  ;;  %v200_v38 = vld [vmem:[%s461_s19 + $0xe8] sm:$0xff] }
  0x1b   : > { %313 = vst [vmem:[%s489_s24 + $0x30] sm:$0xff] %v281_v43  ;;  %v258_v8 = vadd.f32 %v466_v1, %v222_v53  ;;  %v226_v9 = vmul.f32 %v456_v0, %v190_v59  ;;  %v287_v11 = vmax.f32 %v255_v58, 0.0  ;;  %v227_v13 = vmul.f32 %v456_v0, %v191_v63 }
  0x1c   : > { %314 = vst [vmem:[%s489_s24 + $0x38] sm:$0xff] %v282_v51  ;;  %v259_v12 = vadd.f32 %v466_v1, %v223_v3  ;;  %v288_v15 = vmax.f32 %v256_v62, 0.0  ;;  %v260_v16 = vadd.f32 %v466_v1, %v224_v4  ;;  %v228_v17 = vmul.f32 %v456_v0, %v192_v6 }
  0x1d   : > { %315 = vst [vmem:[%s489_s24 + $0x40] sm:$0xff] %v283_v57  ;;  %v289_v19 = vmax.f32 %v257_v2, 0.0  ;;  %v261_v20 = vadd.f32 %v466_v1, %v225_v5  ;;  %v229_v21 = vmul.f32 %v456_v0, %v193_v10  ;;  %v290_v23 = vmax.f32 %v258_v8, 0.0 }
  0x1e   : > { %316 = vst [vmem:[%s489_s24 + $0x48] sm:$0xff] %v284_v60  ;;  %v262_v24 = vadd.f32 %v466_v1, %v226_v9  ;;  %v230_v25 = vmul.f32 %v456_v0, %v194_v14  ;;  %v291_v27 = vmax.f32 %v259_v12, 0.0  ;;  %v263_v28 = vadd.f32 %v466_v1, %v227_v13 }
  0x1f   : > { %317 = vst [vmem:[%s489_s24 + $0x50] sm:$0xff] %v285_v61  ;;  %v231_v29 = vmul.f32 %v456_v0, %v195_v18  ;;  %v292_v31 = vmax.f32 %v260_v16, 0.0  ;;  %v264_v32 = vadd.f32 %v466_v1, %v228_v17  ;;  %v232_v33 = vmul.f32 %v456_v0, %v196_v22 }
  0x20   : > { %318 = vst [vmem:[%s489_s24 + $0x58] sm:$0xff] %v286_v7  ;;  %v293_v35 = vmax.f32 %v261_v20, 0.0  ;;  %v265_v36 = vadd.f32 %v466_v1, %v229_v21  ;;  %v233_v37 = vmul.f32 %v456_v0, %v197_v26  ;;  %v294_v39 = vmax.f32 %v262_v24, 0.0 }
  0x21   : > { %319 = vst [vmem:[%s489_s24 + $0x60] sm:$0xff] %v287_v11  ;;  %v266_v40 = vadd.f32 %v466_v1, %v230_v25  ;;  %v234_v41 = vmul.f32 %v456_v0, %v198_v30  ;;  %v295_v43 = vmax.f32 %v263_v28, 0.0  ;;  %v267_v44 = vadd.f32 %v466_v1, %v231_v29 }
  0x22   : > { %320 = vst [vmem:[%s489_s24 + $0x68] sm:$0xff] %v288_v15  ;;  %v235_v45 = vmul.f32 %v456_v0, %v199_v34  ;;  %v296_v47 = vmax.f32 %v264_v32, 0.0  ;;  %v268_v48 = vadd.f32 %v466_v1, %v232_v33  ;;  %v236_v49 = vmul.f32 %v456_v0, %v200_v38 }
  0x23   : > { %321 = vst [vmem:[%s489_s24 + $0x70] sm:$0xff] %v289_v19  ;;  %v297_v50 = vmax.f32 %v265_v36, 0.0  ;;  %v269_v51 = vadd.f32 %v466_v1, %v233_v37  ;;  %v237_v52 = vmul.f32 %v456_v0, %v201_v42  ;;  %v298_v53 = vmax.f32 %v266_v40, 0.0 }
  0x24   : > { %322 = vst [vmem:[%s489_s24 + $0x78] sm:$0xff] %v290_v23  ;;  %v270_v54 = vadd.f32 %v466_v1, %v234_v41  ;;  %v238_v55 = vmul.f32 %v456_v0, %v202_v46  ;;  %v299_v56 = vmax.f32 %v267_v44, 0.0  ;;  %v271_v57 = vadd.f32 %v466_v1, %v235_v45 }
  0x25   : > { %323 = vst [vmem:[%s489_s24 + $0x80] sm:$0xff] %v291_v27  ;;  %v300_v58 = vmax.f32 %v268_v48, 0.0  ;;  %v272_v59 = vadd.f32 %v466_v1, %v236_v49  ;;  %v301_v60 = vmax.f32 %v269_v51, 0.0  ;;  %v273_v61 = vadd.f32 %v466_v1, %v237_v52 }
  0x26   : > { %324 = vst [vmem:[%s489_s24 + $0x88] sm:$0xff] %v292_v31  ;;  %v302_v0 = vmax.f32 %v270_v54, 0.0  ;;  %v274_v62 = vadd.f32 %v466_v1, %v238_v55  ;;  %v303_v63 = vmax.f32 %v271_v57, 0.0 }
  0x27   : > { %325 = vst [vmem:[%s489_s24 + $0x90] sm:$0xff] %v293_v35  ;;  %v304_v2 = vmax.f32 %v272_v59, 0.0  ;;  %v305_v3 = vmax.f32 %v273_v61, 0.0 }
  0x28   : > { %326 = vst [vmem:[%s489_s24 + $0x98] sm:$0xff] %v294_v39  ;;  %v306_v4 = vmax.f32 %v274_v62, 0.0 }
  0x29   : > { %327 = vst [vmem:[%s489_s24 + $0xa0] sm:$0xff] %v295_v43 }
  0x2a   : > { %328 = vst [vmem:[%s489_s24 + $0xa8] sm:$0xff] %v296_v47 }
  0x2b   : > { %329 = vst [vmem:[%s489_s24 + $0xb0] sm:$0xff] %v297_v50 }
  0x2c   : > { %330 = vst [vmem:[%s489_s24 + $0xb8] sm:$0xff] %v298_v53 }
  0x2d   : > { %331 = vst [vmem:[%s489_s24 + $0xc0] sm:$0xff] %v299_v56 }
  0x2e   : > { %332 = vst [vmem:[%s489_s24 + $0xc8] sm:$0xff] %v300_v58 }
  0x2f   : > { %333 = vst [vmem:[%s489_s24 + $0xd0] sm:$0xff] %v301_v60 }
  0x30   : > { %334 = vst [vmem:[%s489_s24 + $0xd8] sm:$0xff] %v302_v0 }
  0x31   : > { %335 = vst [vmem:[%s489_s24 + $0xe0] sm:$0xff] %v303_v63 }
  0x32   : > { %336 = vst [vmem:[%s489_s24 + $0xe8] sm:$0xff] %v304_v2 }
  0x33   : > { %337 = vst [vmem:[%s489_s24 + $0xf0] sm:$0xff] %v305_v3 }
  0x34   : > { %338 = vst [vmem:[%s489_s24 + $0xf8] sm:$0xff] %v306_v4 }
  0x35 PF: > { %s13_s12 = sadd.s32 1, %s423_s12  }
  0x36   : > { %p10_p4 = scmp.ge.s32.totalorder %s13_s12, 4  }
  0x38   :  { %12 = sbr.rel (!%p10_p4) target bundleno = 1 (0x1), region = 62 }

</bundles_post_ra>
